<compile_context>
chip_gen: v5e
topology: v5e:2x2
jax: 0.10.0
libtpu: 0.0.40
codegen_flags: <defaults>
</compile_context>

<pallas_src>
import functools

import jax
import jax.numpy as jnp
from jax.experimental import pallas as pl
from jax.experimental.pallas import tpu as pltpu

# ---------------- hyperparameters (small, consistent with the module) -------
B = 2                # batch
C = 4                # input channels
IMG = 16             # input spatial size (H = W)
PATCH = 4            # patch_size
NLAYER = 2           # nlayer
HIDDEN = 32          # hidden_dim
MLP_C = 64           # mlp_dim_C  (token-mixing hidden)
MLP_S = 48           # mlp_dim_S  (channel-mixing hidden)
NUM_CLASSES = 10
LOGITS_PAD = 128     # lane-dense padded logits width
SEQ = (IMG // PATCH) ** 2        # 16  = seqlen
FEAT = PATCH * PATCH * C         # 64  = num_features
BH = B * HIDDEN                  # 64  = packed activation lane width
BF = B * FEAT                    # 128 = packed patch lane width
BMS = B * MLP_S                  # 96  = packed channel-mix hidden
BMS_PAD = 128                    # ... zero-padded to a full lane tile
OUT_ROWS = 8                     # sublane-padded logits rows
LN_EPS = 1e-5                    # nn.LayerNorm default eps


# ---------------- shared math helpers ----------------------------------------
def _gelu_exact(x):
    # nn.GELU() default (exact / erf form)
    return 0.5 * x * (1.0 + jax.lax.erf(x * 0.7071067811865476))


# ---------------- host-side slab packing -------------------------------------
def _round8(n):
    return -(-n // 8) * 8


def _pack_slab(entries):
    """entries: list of (name, 2-D f32 array), all with the same lane width.

    Pads every entry to an 8-row multiple and concatenates along rows so that
    all static in-kernel row offsets are sublane-tile aligned.
    Returns (slab_array, {name: (row_offset, real_rows)}).
    """
    offs, parts, row = {}, [], 0
    for name, arr in entries:
        arr = jnp.asarray(arr, jnp.float32)
        r = arr.shape[0]
        rp = _round8(r)
        offs[name] = (row, r)
        if rp != r:
            arr = jnp.pad(arr, ((0, rp - r), (0, 0)))
        parts.append(arr)
        row += rp
    return jnp.concatenate(parts, axis=0), offs


def _block_mask():
    # blockmask[r, b*HIDDEN + h] = 1.0 iff b == r   (rows >= B are all zero)
    r = jax.lax.broadcasted_iota(jnp.int32, (OUT_ROWS, BH), 0)
    c = jax.lax.broadcasted_iota(jnp.int32, (OUT_ROWS, BH), 1)
    return ((c // HIDDEN) == r).astype(jnp.float32)


def _pool_mat():
    # poolmat[r, s] = 1/SEQ for r < B, 0 otherwise  -> pooled rows via matmul
    return jnp.concatenate(
        [jnp.full((B, SEQ), 1.0 / SEQ, jnp.float32),
         jnp.zeros((OUT_ROWS - B, SEQ), jnp.float32)], axis=0)


def pack_params(params):
    """Pack canonical params into 3 contiguous VMEM slabs + static offsets."""
    eye_b = jnp.eye(B, dtype=jnp.float32)

    def tile_lanes(v):                     # (n,) -> (1, B*n), v[i] at lane b*n+i
        return jnp.tile(jnp.asarray(v, jnp.float32)[None, :], (1, B))

    # --- slab A: 16-lane tensors (token-mix first weights + pool matrix) ----
    e16 = []
    for l, lp in enumerate(params["layers"]):
        e16.append((f"tok_w1_{l}", lp["tok_w1"]))                     # (MLP_C, SEQ)
    e16.append(("poolmat", _pool_mat()))                              # (8, SEQ)

    # --- slab B: 64-lane (= B*HIDDEN) tensors --------------------------------
    e64 = [
        ("bd_proj_w", jnp.kron(eye_b, params["proj_w"])),             # (128, 64)
        ("proj_b", tile_lanes(params["proj_b"])),                     # (1, 64)
        ("m_mean", jnp.kron(eye_b,
                            jnp.full((HIDDEN, HIDDEN), 1.0 / HIDDEN,
                                     jnp.float32))),                  # (64, 64)
        ("blockmask", _block_mask()),                                 # (8, 64)
    ]
    for l, lp in enumerate(params["layers"]):
        e64 += [
            (f"ln1_g_{l}", tile_lanes(lp["ln1_g"])),                  # (1, 64)
            (f"ln1_b_{l}", tile_lanes(lp["ln1_b"])),
            (f"tok_b1_{l}", jnp.broadcast_to(lp["tok_b1"][:, None],
                                             (MLP_C, BH))),           # (64, 64)
            (f"tok_w2_{l}", lp["tok_w2"]),                            # (16, 64)
            (f"tok_b2_{l}", jnp.broadcast_to(lp["tok_b2"][:, None],
                                             (SEQ, BH))),             # (16, 64)
            (f"ln2_g_{l}", tile_lanes(lp["ln2_g"])),
            (f"ln2_b_{l}", tile_lanes(lp["ln2_b"])),
            (f"bd_ch_w2_{l}", jnp.pad(jnp.kron(eye_b, lp["ch_w2"]),
                                      ((0, BMS_PAD - BMS), (0, 0)))), # (128, 64)
            (f"ch_b2_{l}", tile_lanes(lp["ch_b2"])),                  # (1, 64)
        ]

    # --- slab C: 128-lane tensors --------------------------------------------
    e128 = []
    for l, lp in enumerate(params["layers"]):
        e128 += [
            (f"bd_ch_w1_{l}", jnp.pad(jnp.kron(eye_b, lp["ch_w1"]),
                                      ((0, 0), (0, BMS_PAD - BMS)))), # (64, 128)
            (f"ch_b1_{l}", jnp.pad(tile_lanes(lp["ch_b1"]),
                                   ((0, 0), (0, BMS_PAD - BMS)))),    # (1, 128)
        ]
    fc_w_pad = jnp.pad(params["fc_w"],
                       ((0, 0), (0, LOGITS_PAD - NUM_CLASSES)))       # (32, 128)
    e128 += [
        ("fc_w", jnp.tile(fc_w_pad, (B, 1))),                         # (64, 128)
        ("fc_b", jnp.pad(params["fc_b"][None, :],
                         ((0, 0), (0, LOGITS_PAD - NUM_CLASSES)))),   # (1, 128)
    ]

    slab16, o16 = _pack_slab(e16)
    slab64, o64 = _pack_slab(e64)
    slab128, o128 = _pack_slab(e128)
    return (slab16, slab64, slab128), (o16, o64, o128)


# ---------------- Pallas kernel (one invocation, whole batch) ----------------
def _make_kernel(o16, o64, o128):
    def kernel(patches_ref, s16_ref, s64_ref, s128_ref, out_ref):
        def view(ref, offs, name):
            off, n = offs[name]                 # static python ints, 8-aligned
            return ref[off:off + n, :]

        g16 = functools.partial(view, s16_ref, o16)
        g64 = functools.partial(view, s64_ref, o64)
        g128 = functools.partial(view, s128_ref, o128)

        m_mean = g64("m_mean")                  # (BH, BH) per-block averaging

        def layernorm(v, gname, bname):
            # Per-32-lane-block LayerNorm (biased, two-pass) via MXU matmuls.
            mu = jnp.dot(v, m_mean, preferred_element_type=jnp.float32)
            d = v - mu
            var = jnp.dot(d * d, m_mean, preferred_element_type=jnp.float32)
            return d * jax.lax.rsqrt(var + LN_EPS) * g64(gname) + g64(bname)

        # linear_proj on the packed (SEQ, B*FEAT) patches -> (SEQ, B*HIDDEN)
        x = jnp.dot(patches_ref[...], g64("bd_proj_w"),
                    preferred_element_type=jnp.float32) + g64("proj_b")

        for l in range(NLAYER):
            # ---- ln1 + TokenMixingMLP (no per-batch loop in packed layout) --
            y = layernorm(x, f"ln1_g_{l}", f"ln1_b_{l}")               # (SEQ, BH)
            h = jnp.dot(g16(f"tok_w1_{l}"), y,
                        preferred_element_type=jnp.float32) + g64(f"tok_b1_{l}")
            h = _gelu_exact(h)                                         # (MLP_C, BH)
            tok = jnp.dot(g64(f"tok_w2_{l}"), h,
                          preferred_element_type=jnp.float32) + g64(f"tok_b2_{l}")
            inter = x + tok                                            # residual 1

            # ---- ln2 + ChannelMixingMLP (block-diag, lane-dense hidden) -----
            y2 = layernorm(inter, f"ln2_g_{l}", f"ln2_b_{l}")
            h2 = jnp.dot(y2, g128(f"bd_ch_w1_{l}"),
                         preferred_element_type=jnp.float32) + g128(f"ch_b1_{l}")
            h2 = _gelu_exact(h2)                                       # (SEQ, 128)
            ch = jnp.dot(h2, g64(f"bd_ch_w2_{l}"),
                         preferred_element_type=jnp.float32) + g64(f"ch_b2_{l}")
            x = inter + ch                                             # residual 2

        # AvgPool1d over SEQ + batched classifier, all via precomputed matrices.
        pooled = jnp.dot(g16("poolmat"), x,
                         preferred_element_type=jnp.float32)           # (8, BH)
        masked = pooled * g64("blockmask")                             # (8, BH)
        logits = jnp.dot(masked, g128("fc_w"),
                         preferred_element_type=jnp.float32) + g128("fc_b")
        out_ref[...] = logits                                          # (8, 128) full-tile store
    return kernel


# ---------------- wrapper -----------------------------------------------------
def mlp_mixer_logits(patches, params):
    (slab16, slab64, slab128), (o16, o64, o128) = pack_params(params)
    # Pack patches as (SEQ, B*FEAT): lanes hold [batch, feature].
    patches_packed = jnp.transpose(patches, (1, 0, 2)).reshape(SEQ, BF)

    vmem = pl.BlockSpec(memory_space=pltpu.MemorySpace.VMEM)
    logits_pad = pl.pallas_call(
        _make_kernel(o16, o64, o128),
        out_shape=jax.ShapeDtypeStruct((OUT_ROWS, LOGITS_PAD), jnp.float32),
        in_specs=[vmem] * 4,
        out_specs=vmem,
    )(patches_packed, slab16, slab64, slab128)
    return logits_pad[:B, :NUM_CLASSES]                                # (B, NUM_CLASSES)


# ---------------- JAX glue (reshapes, params, reference, loss/argmax) --------
def patch_partition(x):
    # x: (B, C, H, W) NCHW  ->  (B, SEQ, FEAT)
    b, c, h, w = x.shape
    x = x.reshape(b, c, h // PATCH, PATCH, w // PATCH, PATCH)
    x = jnp.transpose(x, (0, 2, 4, 3, 5, 1))
    return x.reshape(b, SEQ, FEAT)


def ce_loss_and_pred(logits, labels):
    # CrossEntropyLoss (mean) + argmax over (B, NUM_CLASSES): tiny glue.
    logz = jax.nn.logsumexp(logits, axis=1)
    picked = jnp.take_along_axis(logits, labels[:, None], axis=1)[:, 0]
    loss = jnp.mean(logz - picked)
    preds = jnp.argmax(logits, axis=1)
    return loss, preds


def _ln_ref(x, g, b):
    mu = jnp.mean(x, axis=-1, keepdims=True)
    var = jnp.mean(jnp.square(x - mu), axis=-1, keepdims=True)
    return (x - mu) * jax.lax.rsqrt(var + LN_EPS) * g + b


def reference_forward(patches, params):
    # Pure-JAX mirror of the PyTorch forward (pre-loss), for correctness check.
    x = patches @ params["proj_w"] + params["proj_b"]                  # (B, SEQ, H)
    for lp in params["layers"]:
        y = _ln_ref(x, lp["ln1_g"], lp["ln1_b"])
        yt = jnp.swapaxes(y, 1, 2)                                     # (B, H, SEQ)
        h = _gelu_exact(yt @ lp["tok_w1"].T + lp["tok_b1"])            # (B, H, MLP_C)
        t = h @ lp["tok_w2"].T + lp["tok_b2"]                          # (B, H, SEQ)
        inter = x + jnp.swapaxes(t, 1, 2)
        y2 = _ln_ref(inter, lp["ln2_g"], lp["ln2_b"])
        h2 = _gelu_exact(y2 @ lp["ch_w1"] + lp["ch_b1"])               # (B, SEQ, MLP_S)
        x = inter + h2 @ lp["ch_w2"] + lp["ch_b2"]
    pooled = jnp.mean(x, axis=1)                                       # (B, H)
    return pooled @ params["fc_w"] + params["fc_b"]                    # (B, 10)


def init_params(key):
    def nrm(k, shape, scale=0.02):
        return scale * jax.random.normal(k, shape, jnp.float32)

    ks = iter(jax.random.split(key, 4 + NLAYER * 8))
    layers = []
    for _ in range(NLAYER):
        layers.append({
            "ln1_g": jnp.ones((HIDDEN,), jnp.float32),
            "ln1_b": jnp.zeros((HIDDEN,), jnp.float32),
            "tok_w1": nrm(next(ks), (MLP_C, SEQ)),    # Linear(SEQ, MLP_C) weight (out, in)
            "tok_b1": nrm(next(ks), (MLP_C,)),
            "tok_w2": nrm(next(ks), (SEQ, MLP_C)),    # Linear(MLP_C, SEQ) weight (out, in)
            "tok_b2": nrm(next(ks), (SEQ,)),
            "ln2_g": jnp.ones((HIDDEN,), jnp.float32),
            "ln2_b": jnp.zeros((HIDDEN,), jnp.float32),
            "ch_w1": nrm(next(ks), (HIDDEN, MLP_S)),  # (in, out) convention
            "ch_b1": nrm(next(ks), (MLP_S,)),
            "ch_w2": nrm(next(ks), (MLP_S, HIDDEN)),
            "ch_b2": nrm(next(ks), (HIDDEN,)),
        })
    return {
        "proj_w": nrm(next(ks), (FEAT, HIDDEN)),      # (in, out) convention
        "proj_b": nrm(next(ks), (HIDDEN,)),
        "layers": layers,
        "fc_w": nrm(next(ks), (HIDDEN, NUM_CLASSES)),
        "fc_b": nrm(next(ks), (NUM_CLASSES,)),
    }
    # NOTE: dropout=0.1 exists in __init__ but is never applied in forward().


if __name__ == "__main__":
    key = jax.random.PRNGKey(0)
    kx, kl, kp = jax.random.split(key, 3)

    x = jax.random.normal(kx, (B, C, IMG, IMG), jnp.float32)   # NCHW input
    labels = jax.random.randint(kl, (B,), 0, NUM_CLASSES)
    params = init_params(kp)

    patches = patch_partition(x)
    logits = mlp_mixer_logits(patches, params)
    loss, preds = ce_loss_and_pred(logits, labels)
    jax.block_until_ready((logits, loss, preds))

    # Correctness check against a pure-JAX forward of the same module.
    ref = reference_forward(patches, params)
    max_err = float(jnp.max(jnp.abs(logits - ref)))
    assert logits.shape == (B, NUM_CLASSES)
    assert preds.shape == (B,)
    assert max_err < 1e-4, f"kernel/reference mismatch: {max_err}"
    print("KERNEL_OK")
</pallas_src>

<mosaic_0001>
module attributes {stable_mosaic.version = 11 : i64} {
  func.func @kernel(%arg0: memref<16x128xf32, #tpu.memory_space<vmem>>, %arg1: memref<136x16xf32, #tpu.memory_space<vmem>>, %arg2: memref<736x64xf32, #tpu.memory_space<vmem>>, %arg3: memref<216x128xf32, #tpu.memory_space<vmem>>, %arg4: memref<8x128xf32, #tpu.memory_space<vmem>>) attributes {dimension_semantics = [], scalar_prefetch = 0 : i64, scratch_operands = 0 : i64, tpu.core_type = #tpu.core_type<tc>} {
    %c136 = arith.constant 136 : index
    %c0 = arith.constant 0 : index
    %0 = vector.load %arg2[%c136, %c0] : memref<736x64xf32, #tpu.memory_space<vmem>>, vector<64x64xf32>
    %c0_0 = arith.constant 0 : index
    %c0_1 = arith.constant 0 : index
    %1 = vector.load %arg0[%c0_0, %c0_1] : memref<16x128xf32, #tpu.memory_space<vmem>>, vector<16x128xf32>
    %c0_2 = arith.constant 0 : index
    %c0_3 = arith.constant 0 : index
    %2 = vector.load %arg2[%c0_2, %c0_3] : memref<736x64xf32, #tpu.memory_space<vmem>>, vector<128x64xf32>
    %cst = arith.constant dense<0.000000e+00> : vector<16x64xf32>
    %3 = tpu.matmul %1, %2, %cst {dimension_numbers = #tpu.dot_dimension_numbers<[1], [0], [0], [1], [0, 0, 1, 1], [], []>} : vector<16x128xf32>, vector<128x64xf32>, vector<16x64xf32> -> vector<16x64xf32>
    %c128 = arith.constant 128 : index
    %c0_4 = arith.constant 0 : index
    %4 = vector.load %arg2[%c128, %c0_4] : memref<736x64xf32, #tpu.memory_space<vmem>>, vector<1x64xf32>
    %5 = vector.broadcast %4 : vector<1x64xf32> to vector<16x64xf32>
    %6 = arith.addf %3, %5 : vector<16x64xf32>
    %cst_5 = arith.constant dense<0.000000e+00> : vector<16x64xf32>
    %7 = tpu.matmul %6, %0, %cst_5 {dimension_numbers = #tpu.dot_dimension_numbers<[1], [0], [0], [1], [0, 0, 1, 1], [], []>} : vector<16x64xf32>, vector<64x64xf32>, vector<16x64xf32> -> vector<16x64xf32>
    %8 = arith.subf %6, %7 : vector<16x64xf32>
    %9 = arith.mulf %8, %8 : vector<16x64xf32>
    %cst_6 = arith.constant dense<0.000000e+00> : vector<16x64xf32>
    %10 = tpu.matmul %9, %0, %cst_6 {dimension_numbers = #tpu.dot_dimension_numbers<[1], [0], [0], [1], [0, 0, 1, 1], [], []>} : vector<16x64xf32>, vector<64x64xf32>, vector<16x64xf32> -> vector<16x64xf32>
    %cst_7 = arith.constant 9.99999974E-6 : f32
    %11 = vector.broadcast %cst_7 : f32 to vector<16x64xf32>
    %12 = arith.addf %10, %11 : vector<16x64xf32>
    %13 = math.rsqrt %12 : vector<16x64xf32>
    %14 = arith.mulf %8, %13 : vector<16x64xf32>
    %c208 = arith.constant 208 : index
    %c0_8 = arith.constant 0 : index
    %15 = vector.load %arg2[%c208, %c0_8] : memref<736x64xf32, #tpu.memory_space<vmem>>, vector<1x64xf32>
    %16 = vector.broadcast %15 : vector<1x64xf32> to vector<16x64xf32>
    %17 = arith.mulf %14, %16 : vector<16x64xf32>
    %c216 = arith.constant 216 : index
    %c0_9 = arith.constant 0 : index
    %18 = vector.load %arg2[%c216, %c0_9] : memref<736x64xf32, #tpu.memory_space<vmem>>, vector<1x64xf32>
    %19 = vector.broadcast %18 : vector<1x64xf32> to vector<16x64xf32>
    %20 = arith.addf %17, %19 : vector<16x64xf32>
    %c0_10 = arith.constant 0 : index
    %c0_11 = arith.constant 0 : index
    %21 = vector.load %arg1[%c0_10, %c0_11] : memref<136x16xf32, #tpu.memory_space<vmem>>, vector<64x16xf32>
    %cst_12 = arith.constant dense<0.000000e+00> : vector<64x64xf32>
    %22 = tpu.matmul %21, %20, %cst_12 {dimension_numbers = #tpu.dot_dimension_numbers<[1], [0], [0], [1], [0, 0, 1, 1], [], []>} : vector<64x16xf32>, vector<16x64xf32>, vector<64x64xf32> -> vector<64x64xf32>
    %c224 = arith.constant 224 : index
    %c0_13 = arith.constant 0 : index
    %23 = vector.load %arg2[%c224, %c0_13] : memref<736x64xf32, #tpu.memory_space<vmem>>, vector<64x64xf32>
    %24 = arith.addf %22, %23 : vector<64x64xf32>
    %cst_14 = arith.constant 5.000000e-01 : f32
    %25 = vector.broadcast %cst_14 : f32 to vector<64x64xf32>
    %26 = arith.mulf %25, %24 : vector<64x64xf32>
    %cst_15 = arith.constant 0.707106769 : f32
    %27 = vector.broadcast %cst_15 : f32 to vector<64x64xf32>
    %28 = arith.mulf %24, %27 : vector<64x64xf32>
    %29 = math.erf %28 : vector<64x64xf32>
    %cst_16 = arith.constant 1.000000e+00 : f32
    %30 = vector.broadcast %cst_16 : f32 to vector<64x64xf32>
    %31 = arith.addf %30, %29 : vector<64x64xf32>
    %32 = arith.mulf %26, %31 : vector<64x64xf32>
    %c288 = arith.constant 288 : index
    %c0_17 = arith.constant 0 : index
    %33 = vector.load %arg2[%c288, %c0_17] : memref<736x64xf32, #tpu.memory_space<vmem>>, vector<16x64xf32>
    %cst_18 = arith.constant dense<0.000000e+00> : vector<16x64xf32>
    %34 = tpu.matmul %33, %32, %cst_18 {dimension_numbers = #tpu.dot_dimension_numbers<[1], [0], [0], [1], [0, 0, 1, 1], [], []>} : vector<16x64xf32>, vector<64x64xf32>, vector<16x64xf32> -> vector<16x64xf32>
    %c304 = arith.constant 304 : index
    %c0_19 = arith.constant 0 : index
    %35 = vector.load %arg2[%c304, %c0_19] : memref<736x64xf32, #tpu.memory_space<vmem>>, vector<16x64xf32>
    %36 = arith.addf %34, %35 : vector<16x64xf32>
    %37 = arith.addf %6, %36 : vector<16x64xf32>
    %cst_20 = arith.constant dense<0.000000e+00> : vector<16x64xf32>
    %38 = tpu.matmul %37, %0, %cst_20 {dimension_numbers = #tpu.dot_dimension_numbers<[1], [0], [0], [1], [0, 0, 1, 1], [], []>} : vector<16x64xf32>, vector<64x64xf32>, vector<16x64xf32> -> vector<16x64xf32>
    %39 = arith.subf %37, %38 : vector<16x64xf32>
    %40 = arith.mulf %39, %39 : vector<16x64xf32>
    %cst_21 = arith.constant dense<0.000000e+00> : vector<16x64xf32>
    %41 = tpu.matmul %40, %0, %cst_21 {dimension_numbers = #tpu.dot_dimension_numbers<[1], [0], [0], [1], [0, 0, 1, 1], [], []>} : vector<16x64xf32>, vector<64x64xf32>, vector<16x64xf32> -> vector<16x64xf32>
    %cst_22 = arith.constant 9.99999974E-6 : f32
    %42 = vector.broadcast %cst_22 : f32 to vector<16x64xf32>
    %43 = arith.addf %41, %42 : vector<16x64xf32>
    %44 = math.rsqrt %43 : vector<16x64xf32>
    %45 = arith.mulf %39, %44 : vector<16x64xf32>
    %c320 = arith.constant 320 : index
    %c0_23 = arith.constant 0 : index
    %46 = vector.load %arg2[%c320, %c0_23] : memref<736x64xf32, #tpu.memory_space<vmem>>, vector<1x64xf32>
    %47 = vector.broadcast %46 : vector<1x64xf32> to vector<16x64xf32>
    %48 = arith.mulf %45, %47 : vector<16x64xf32>
    %c328 = arith.constant 328 : index
    %c0_24 = arith.constant 0 : index
    %49 = vector.load %arg2[%c328, %c0_24] : memref<736x64xf32, #tpu.memory_space<vmem>>, vector<1x64xf32>
    %50 = vector.broadcast %49 : vector<1x64xf32> to vector<16x64xf32>
    %51 = arith.addf %48, %50 : vector<16x64xf32>
    %c0_25 = arith.constant 0 : index
    %c0_26 = arith.constant 0 : index
    %52 = vector.load %arg3[%c0_25, %c0_26] : memref<216x128xf32, #tpu.memory_space<vmem>>, vector<64x128xf32>
    %cst_27 = arith.constant dense<0.000000e+00> : vector<16x128xf32>
    %53 = tpu.matmul %51, %52, %cst_27 {dimension_numbers = #tpu.dot_dimension_numbers<[1], [0], [0], [1], [0, 0, 1, 1], [], []>} : vector<16x64xf32>, vector<64x128xf32>, vector<16x128xf32> -> vector<16x128xf32>
    %c64 = arith.constant 64 : index
    %c0_28 = arith.constant 0 : index
    %54 = vector.load %arg3[%c64, %c0_28] : memref<216x128xf32, #tpu.memory_space<vmem>>, vector<1x128xf32>
    %55 = vector.broadcast %54 : vector<1x128xf32> to vector<16x128xf32>
    %56 = arith.addf %53, %55 : vector<16x128xf32>
    %cst_29 = arith.constant 5.000000e-01 : f32
    %57 = vector.broadcast %cst_29 : f32 to vector<16x128xf32>
    %58 = arith.mulf %57, %56 : vector<16x128xf32>
    %cst_30 = arith.constant 0.707106769 : f32
    %59 = vector.broadcast %cst_30 : f32 to vector<16x128xf32>
    %60 = arith.mulf %56, %59 : vector<16x128xf32>
    %61 = math.erf %60 : vector<16x128xf32>
    %cst_31 = arith.constant 1.000000e+00 : f32
    %62 = vector.broadcast %cst_31 : f32 to vector<16x128xf32>
    %63 = arith.addf %62, %61 : vector<16x128xf32>
    %64 = arith.mulf %58, %63 : vector<16x128xf32>
    %c336 = arith.constant 336 : index
    %c0_32 = arith.constant 0 : index
    %65 = vector.load %arg2[%c336, %c0_32] : memref<736x64xf32, #tpu.memory_space<vmem>>, vector<128x64xf32>
    %cst_33 = arith.constant dense<0.000000e+00> : vector<16x64xf32>
    %66 = tpu.matmul %64, %65, %cst_33 {dimension_numbers = #tpu.dot_dimension_numbers<[1], [0], [0], [1], [0, 0, 1, 1], [], []>} : vector<16x128xf32>, vector<128x64xf32>, vector<16x64xf32> -> vector<16x64xf32>
    %c464 = arith.constant 464 : index
    %c0_34 = arith.constant 0 : index
    %67 = vector.load %arg2[%c464, %c0_34] : memref<736x64xf32, #tpu.memory_space<vmem>>, vector<1x64xf32>
    %68 = vector.broadcast %67 : vector<1x64xf32> to vector<16x64xf32>
    %69 = arith.addf %66, %68 : vector<16x64xf32>
    %70 = arith.addf %37, %69 : vector<16x64xf32>
    %cst_35 = arith.constant dense<0.000000e+00> : vector<16x64xf32>
    %71 = tpu.matmul %70, %0, %cst_35 {dimension_numbers = #tpu.dot_dimension_numbers<[1], [0], [0], [1], [0, 0, 1, 1], [], []>} : vector<16x64xf32>, vector<64x64xf32>, vector<16x64xf32> -> vector<16x64xf32>
    %72 = arith.subf %70, %71 : vector<16x64xf32>
    %73 = arith.mulf %72, %72 : vector<16x64xf32>
    %cst_36 = arith.constant dense<0.000000e+00> : vector<16x64xf32>
    %74 = tpu.matmul %73, %0, %cst_36 {dimension_numbers = #tpu.dot_dimension_numbers<[1], [0], [0], [1], [0, 0, 1, 1], [], []>} : vector<16x64xf32>, vector<64x64xf32>, vector<16x64xf32> -> vector<16x64xf32>
    %cst_37 = arith.constant 9.99999974E-6 : f32
    %75 = vector.broadcast %cst_37 : f32 to vector<16x64xf32>
    %76 = arith.addf %74, %75 : vector<16x64xf32>
    %77 = math.rsqrt %76 : vector<16x64xf32>
    %78 = arith.mulf %72, %77 : vector<16x64xf32>
    %c472 = arith.constant 472 : index
    %c0_38 = arith.constant 0 : index
    %79 = vector.load %arg2[%c472, %c0_38] : memref<736x64xf32, #tpu.memory_space<vmem>>, vector<1x64xf32>
    %80 = vector.broadcast %79 : vector<1x64xf32> to vector<16x64xf32>
    %81 = arith.mulf %78, %80 : vector<16x64xf32>
    %c480 = arith.constant 480 : index
    %c0_39 = arith.constant 0 : index
    %82 = vector.load %arg2[%c480, %c0_39] : memref<736x64xf32, #tpu.memory_space<vmem>>, vector<1x64xf32>
    %83 = vector.broadcast %82 : vector<1x64xf32> to vector<16x64xf32>
    %84 = arith.addf %81, %83 : vector<16x64xf32>
    %c64_40 = arith.constant 64 : index
    %c0_41 = arith.constant 0 : index
    %85 = vector.load %arg1[%c64_40, %c0_41] : memref<136x16xf32, #tpu.memory_space<vmem>>, vector<64x16xf32>
    %cst_42 = arith.constant dense<0.000000e+00> : vector<64x64xf32>
    %86 = tpu.matmul %85, %84, %cst_42 {dimension_numbers = #tpu.dot_dimension_numbers<[1], [0], [0], [1], [0, 0, 1, 1], [], []>} : vector<64x16xf32>, vector<16x64xf32>, vector<64x64xf32> -> vector<64x64xf32>
    %c488 = arith.constant 488 : index
    %c0_43 = arith.constant 0 : index
    %87 = vector.load %arg2[%c488, %c0_43] : memref<736x64xf32, #tpu.memory_space<vmem>>, vector<64x64xf32>
    %88 = arith.addf %86, %87 : vector<64x64xf32>
    %cst_44 = arith.constant 5.000000e-01 : f32
    %89 = vector.broadcast %cst_44 : f32 to vector<64x64xf32>
    %90 = arith.mulf %89, %88 : vector<64x64xf32>
    %cst_45 = arith.constant 0.707106769 : f32
    %91 = vector.broadcast %cst_45 : f32 to vector<64x64xf32>
    %92 = arith.mulf %88, %91 : vector<64x64xf32>
    %93 = math.erf %92 : vector<64x64xf32>
    %cst_46 = arith.constant 1.000000e+00 : f32
    %94 = vector.broadcast %cst_46 : f32 to vector<64x64xf32>
    %95 = arith.addf %94, %93 : vector<64x64xf32>
    %96 = arith.mulf %90, %95 : vector<64x64xf32>
    %c552 = arith.constant 552 : index
    %c0_47 = arith.constant 0 : index
    %97 = vector.load %arg2[%c552, %c0_47] : memref<736x64xf32, #tpu.memory_space<vmem>>, vector<16x64xf32>
    %cst_48 = arith.constant dense<0.000000e+00> : vector<16x64xf32>
    %98 = tpu.matmul %97, %96, %cst_48 {dimension_numbers = #tpu.dot_dimension_numbers<[1], [0], [0], [1], [0, 0, 1, 1], [], []>} : vector<16x64xf32>, vector<64x64xf32>, vector<16x64xf32> -> vector<16x64xf32>
    %c568 = arith.constant 568 : index
    %c0_49 = arith.constant 0 : index
    %99 = vector.load %arg2[%c568, %c0_49] : memref<736x64xf32, #tpu.memory_space<vmem>>, vector<16x64xf32>
    %100 = arith.addf %98, %99 : vector<16x64xf32>
    %101 = arith.addf %70, %100 : vector<16x64xf32>
    %cst_50 = arith.constant dense<0.000000e+00> : vector<16x64xf32>
    %102 = tpu.matmul %101, %0, %cst_50 {dimension_numbers = #tpu.dot_dimension_numbers<[1], [0], [0], [1], [0, 0, 1, 1], [], []>} : vector<16x64xf32>, vector<64x64xf32>, vector<16x64xf32> -> vector<16x64xf32>
    %103 = arith.subf %101, %102 : vector<16x64xf32>
    %104 = arith.mulf %103, %103 : vector<16x64xf32>
    %cst_51 = arith.constant dense<0.000000e+00> : vector<16x64xf32>
    %105 = tpu.matmul %104, %0, %cst_51 {dimension_numbers = #tpu.dot_dimension_numbers<[1], [0], [0], [1], [0, 0, 1, 1], [], []>} : vector<16x64xf32>, vector<64x64xf32>, vector<16x64xf32> -> vector<16x64xf32>
    %cst_52 = arith.constant 9.99999974E-6 : f32
    %106 = vector.broadcast %cst_52 : f32 to vector<16x64xf32>
    %107 = arith.addf %105, %106 : vector<16x64xf32>
    %108 = math.rsqrt %107 : vector<16x64xf32>
    %109 = arith.mulf %103, %108 : vector<16x64xf32>
    %c584 = arith.constant 584 : index
    %c0_53 = arith.constant 0 : index
    %110 = vector.load %arg2[%c584, %c0_53] : memref<736x64xf32, #tpu.memory_space<vmem>>, vector<1x64xf32>
    %111 = vector.broadcast %110 : vector<1x64xf32> to vector<16x64xf32>
    %112 = arith.mulf %109, %111 : vector<16x64xf32>
    %c592 = arith.constant 592 : index
    %c0_54 = arith.constant 0 : index
    %113 = vector.load %arg2[%c592, %c0_54] : memref<736x64xf32, #tpu.memory_space<vmem>>, vector<1x64xf32>
    %114 = vector.broadcast %113 : vector<1x64xf32> to vector<16x64xf32>
    %115 = arith.addf %112, %114 : vector<16x64xf32>
    %c72 = arith.constant 72 : index
    %c0_55 = arith.constant 0 : index
    %116 = vector.load %arg3[%c72, %c0_55] : memref<216x128xf32, #tpu.memory_space<vmem>>, vector<64x128xf32>
    %cst_56 = arith.constant dense<0.000000e+00> : vector<16x128xf32>
    %117 = tpu.matmul %115, %116, %cst_56 {dimension_numbers = #tpu.dot_dimension_numbers<[1], [0], [0], [1], [0, 0, 1, 1], [], []>} : vector<16x64xf32>, vector<64x128xf32>, vector<16x128xf32> -> vector<16x128xf32>
    %c136_57 = arith.constant 136 : index
    %c0_58 = arith.constant 0 : index
    %118 = vector.load %arg3[%c136_57, %c0_58] : memref<216x128xf32, #tpu.memory_space<vmem>>, vector<1x128xf32>
    %119 = vector.broadcast %118 : vector<1x128xf32> to vector<16x128xf32>
    %120 = arith.addf %117, %119 : vector<16x128xf32>
    %cst_59 = arith.constant 5.000000e-01 : f32
    %121 = vector.broadcast %cst_59 : f32 to vector<16x128xf32>
    %122 = arith.mulf %121, %120 : vector<16x128xf32>
    %cst_60 = arith.constant 0.707106769 : f32
    %123 = vector.broadcast %cst_60 : f32 to vector<16x128xf32>
    %124 = arith.mulf %120, %123 : vector<16x128xf32>
    %125 = math.erf %124 : vector<16x128xf32>
    %cst_61 = arith.constant 1.000000e+00 : f32
    %126 = vector.broadcast %cst_61 : f32 to vector<16x128xf32>
    %127 = arith.addf %126, %125 : vector<16x128xf32>
    %128 = arith.mulf %122, %127 : vector<16x128xf32>
    %c600 = arith.constant 600 : index
    %c0_62 = arith.constant 0 : index
    %129 = vector.load %arg2[%c600, %c0_62] : memref<736x64xf32, #tpu.memory_space<vmem>>, vector<128x64xf32>
    %cst_63 = arith.constant dense<0.000000e+00> : vector<16x64xf32>
    %130 = tpu.matmul %128, %129, %cst_63 {dimension_numbers = #tpu.dot_dimension_numbers<[1], [0], [0], [1], [0, 0, 1, 1], [], []>} : vector<16x128xf32>, vector<128x64xf32>, vector<16x64xf32> -> vector<16x64xf32>
    %c728 = arith.constant 728 : index
    %c0_64 = arith.constant 0 : index
    %131 = vector.load %arg2[%c728, %c0_64] : memref<736x64xf32, #tpu.memory_space<vmem>>, vector<1x64xf32>
    %132 = vector.broadcast %131 : vector<1x64xf32> to vector<16x64xf32>
    %133 = arith.addf %130, %132 : vector<16x64xf32>
    %134 = arith.addf %101, %133 : vector<16x64xf32>
    %c128_65 = arith.constant 128 : index
    %c0_66 = arith.constant 0 : index
    %135 = vector.load %arg1[%c128_65, %c0_66] : memref<136x16xf32, #tpu.memory_space<vmem>>, vector<8x16xf32>
    %cst_67 = arith.constant dense<0.000000e+00> : vector<8x64xf32>
    %136 = tpu.matmul %135, %134, %cst_67 {dimension_numbers = #tpu.dot_dimension_numbers<[1], [0], [0], [1], [0, 0, 1, 1], [], []>} : vector<8x16xf32>, vector<16x64xf32>, vector<8x64xf32> -> vector<8x64xf32>
    %c200 = arith.constant 200 : index
    %c0_68 = arith.constant 0 : index
    %137 = vector.load %arg2[%c200, %c0_68] : memref<736x64xf32, #tpu.memory_space<vmem>>, vector<8x64xf32>
    %138 = arith.mulf %136, %137 : vector<8x64xf32>
    %c144 = arith.constant 144 : index
    %c0_69 = arith.constant 0 : index
    %139 = vector.load %arg3[%c144, %c0_69] : memref<216x128xf32, #tpu.memory_space<vmem>>, vector<64x128xf32>
    %cst_70 = arith.constant dense<0.000000e+00> : vector<8x128xf32>
    %140 = tpu.matmul %138, %139, %cst_70 {dimension_numbers = #tpu.dot_dimension_numbers<[1], [0], [0], [1], [0, 0, 1, 1], [], []>} : vector<8x64xf32>, vector<64x128xf32>, vector<8x128xf32> -> vector<8x128xf32>
    %c208_71 = arith.constant 208 : index
    %c0_72 = arith.constant 0 : index
    %141 = vector.load %arg3[%c208_71, %c0_72] : memref<216x128xf32, #tpu.memory_space<vmem>>, vector<1x128xf32>
    %142 = vector.broadcast %141 : vector<1x128xf32> to vector<8x128xf32>
    %143 = arith.addf %140, %142 : vector<8x128xf32>
    %c0_73 = arith.constant 0 : index
    %c0_74 = arith.constant 0 : index
    %144 = vector.load %arg4[%c0_73, %c0_74] : memref<8x128xf32, #tpu.memory_space<vmem>>, vector<8x128xf32>
    tpu.vector_store %arg4[%c0_73, %c0_74], %143 {strides = array<i32>} : memref<8x128xf32, #tpu.memory_space<vmem>>, vector<8x128xf32>,
    return
  }
}

</mosaic_0001>

<bundles_post_ra>
// kernel: tpu_custom_call.1
= control target key start
LH: loop header
LB: loop body
LE: loop exit
PB: predicated region body
PF: predicated region fallthrough
CT: control target
= control target key end

     0   :  { %s3402_s0 = inlined_call_operand.vmem [shape: f32[16,128], index: 0, kind: input, shape index: {}]   ;;  %s3403_s1 = inlined_call_operand.vmem [shape: f32[136,16], index: 1, kind: input, shape index: {}]   ;;  %s3404_s2 = inlined_call_operand.vmem [shape: f32[736,64], index: 2, kind: input, shape index: {}]   ;;  %s3405_s3 = inlined_call_operand.vmem [shape: f32[216,128], index: 3, kind: input, shape index: {}]   ;;  %s3406_s4 = inlined_call_operand.hbm [shape: f32[8,128], index: 4, kind: output, shape index: {}]  }
   0x1   :  { %v43_v0 = vld [vmem:[%s3404_s2 + $0x78] sm:$0xff]  ;;  %v42_v1 = vld [vmem:[%s3404_s2 + $0x70] sm:$0xff]  ;;  %v41_v2 = vld [vmem:[%s3404_s2 + $0x68] sm:$0xff] }
   0x2   :  { %46 = vmatpush.msra.mxu0 %v43_v0  ;;  %v40_v3 = vld [vmem:[%s3404_s2 + $0x60] sm:$0xff]  ;;  %v39_v4 = vld [vmem:[%s3404_s2 + $0x58] sm:$0xff]  ;;  %v38_v5 = vld [vmem:[%s3404_s2 + $0x50] sm:$0xff] }
   0x3   :  { %v25_v6 = vld [vmem:[%s3404_s2 + $0xc0] sm:$0xff]  ;;  %v24_v7 = vld [vmem:[%s3404_s2 + $0xb8] sm:$0xff]  ;;  %v37_v8 = vld [vmem:[%s3404_s2 + $0x48] sm:$0xff] }
   0x4   :  { %47 = vmatpush.msra.mxu0 %v42_v1  ;;  %84 = vmatpush.msra.mxu1 %v25_v6  ;;  %v23_v9 = vld [vmem:[%s3404_s2 + $0xb0] sm:$0xff]  ;;  %v36_v10 = vld [vmem:[%s3404_s2 + $0x40] sm:$0xff]  ;;  %v22_v11 = vld [vmem:[%s3404_s2 + $0xa8] sm:$0xff] }
   0x5   :  { %117 = vmatpush.msra.mxu2 %v25_v6 }
   0x6   :  { %48 = vmatpush.msra.mxu0 %v41_v2  ;;  %85 = vmatpush.msra.mxu1 %v24_v7 }
   0x7   :  { %118 = vmatpush.msra.mxu2 %v24_v7 }
   0x8   :  { %49 = vmatpush.msra.mxu0 %v40_v3  ;;  %86 = vmatpush.msra.mxu1 %v23_v9 }
   0xa   :  { %50 = vmatpush.msra.mxu0 %v39_v4 }
   0xc   :  { %51 = vmatpush.msra.mxu0 %v38_v5 }
   0xe   :  { %52 = vmatpush.msra.mxu0 %v37_v8 }
   0xf   :  { %9 = vsyncpa [#allocation3], 0  ;;  %v35_v12 = vld [vmem:[%s3404_s2 + $0x38] sm:$0xff]  ;;  %v21_v13 = vld [vmem:[%s3404_s2 + $0xa0] sm:$0xff]  ;;  %119 = vmatpush.msra.mxu2 %v23_v9  ;;  %87 = vmatpush.msra.mxu1 %v22_v11  ;;  %vm69_vm0 = vcmask 523264   ;;  %vm178_vm7 = vcmask 130048  }
  0x10   :  { %53 = vmatpush.msra.mxu0 %v36_v10  ;;  %v34_v14 = vld [vmem:[%s3404_s2 + $0x30] sm:$0xff]  ;;  %v20_v15 = vld [vmem:[%s3404_s2 + $0x98] sm:$0xff]  ;;  %v33_v16 = vld [vmem:[%s3404_s2 + $0x28] sm:$0xff] }
  0x11   :  { %120 = vmatpush.msra.mxu2 %v22_v11  ;;  %88 = vmatpush.msra.mxu1 %v21_v13  ;;  %v32_v17 = vld [vmem:[%s3404_s2 + $0x20] sm:$0xff]  ;;  %v31_v18 = vld [vmem:[%s3404_s2 + $0x18] sm:$0xff]  ;;  %v30_v19 = vld [vmem:[%s3404_s2 + $0x10] sm:$0xff] }
  0x12   :  { %54 = vmatpush.msra.mxu0 %v35_v12  ;;  %v29_v20 = vld [vmem:[%s3404_s2 + $0x8] sm:$0xff]  ;;  %v28_v21 = vld [vmem:[%s3404_s2] sm:$0xff]  ;;  %v19_v24 = vld [vmem:[%s3404_s2 + $0x90] sm:$0xff] }
  0x13   :  { %121 = vmatpush.msra.mxu2 %v21_v13  ;;  %89 = vmatpush.msra.mxu1 %v20_v15  ;;  %v26_v22 = vld [vmem:[%s3402_s0] sm:$0xff]  ;;  %v27_v23 = vld [vmem:[%s3402_s0 + $0x8] sm:$0xff]  ;;  %v1855_v54 = vld [vmem:[%s3404_s2 + $0xd0] ss:$0 sm:$0xff]  ;;  %s1782_s0 = sshll.u32 %s3406_s4, 4  ;;  %s1783_s0 = int_to_ptr.hbm [resolvable:$true] %s1782_s0 }
  0x14   :  { %55 = vmatpush.msra.mxu0 %v34_v14  ;;  %v18_v25 = vld [vmem:[%s3404_s2 + $0x88] sm:$0xff]  ;;  %v1854_v26 = vld [vmem:[%s3404_s2 + $0x80] ss:$0 sm:$0xff]  ;;  %v1856_v59 = vld [vmem:[%s3404_s2 + $0xd8] ss:$0 sm:$0xff] }
  0x15   :  { %122 = vmatpush.msra.mxu2 %v20_v15  ;;  %90 = vmatpush.msra.mxu1 %v19_v24  ;;  %v162_v63 = vld [vmem:[%s3403_s1] sm:$0xff]  ;;  %v163_v0 = vld [vmem:[%s3403_s1 + $0x8] sm:$0xff]  ;;  %v164_v1 = vld [vmem:[%s3403_s1 + $0x10] sm:$0xff] }
  0x16   :  { %56 = vmatpush.msra.mxu0 %v33_v16  ;;  %v165_v2 = vld [vmem:[%s3403_s1 + $0x18] sm:$0xff]  ;;  %v166_v3 = vld [vmem:[%s3403_s1 + $0x20] sm:$0xff]  ;;  %v167_v4 = vld [vmem:[%s3403_s1 + $0x28] sm:$0xff] }
  0x17   :  { %123 = vmatpush.msra.mxu2 %v19_v24  ;;  %91 = vmatpush.msra.mxu1 %v18_v25  ;;  %v168_v5 = vld [vmem:[%s3403_s1 + $0x30] sm:$0xff]  ;;  %v171_v8 = vld [vmem:[%s3404_s2 + $0xe8] sm:$0xff]  ;;  %v170_v12 = vld [vmem:[%s3404_s2 + $0xe0] sm:$0xff] }
  0x18   :  { %57 = vmatpush.msra.mxu0 %v32_v17  ;;  %v172_v14 = vld [vmem:[%s3404_s2 + $0xf0] sm:$0xff] }
  0x19   :  { %124 = vmatpush.msra.mxu2 %v18_v25 }
  0x1a   :  { %58 = vmatpush.msra.mxu0 %v31_v18 }
  0x1b   :  { %645 = vmatpush.msrb.mxu2 %v25_v6 }
  0x1c   :  { %59 = vmatpush.msra.mxu0 %v30_v19 }
  0x1d   :  { %646 = vmatpush.msrb.mxu2 %v24_v7 }
  0x1e   :  { %60 = vmatpush.msra.mxu0 %v29_v20 }
  0x1f   :  { %647 = vmatpush.msrb.mxu2 %v23_v9 }
  0x20   :  { %61 = vmatpush.msra.mxu0 %v28_v21 }
  0x21   :  { %62 = vmatmul.f32.vlgmr.msra.gmra.mxu0 %v26_v22  ;;  %648 = vmatpush.msrb.mxu2 %v22_v11  ;;  %v173_v22 = vld [vmem:[%s3404_s2 + $0xf8] sm:$0xff] }
  0x22   :  { %678 = vmatpush.msrb.mxu0 %v25_v6 }
  0x23   :  { %649 = vmatpush.msrb.mxu2 %v21_v13 }
  0x24   :  { %679 = vmatpush.msrb.mxu0 %v24_v7 }
  0x25   :  { %650 = vmatpush.msrb.mxu2 %v20_v15 }
  0x26   :  { %680 = vmatpush.msrb.mxu0 %v23_v9 }
  0x27   :  { %651 = vmatpush.msrb.mxu2 %v19_v24 }
  0x28   :  { %681 = vmatpush.msrb.mxu0 %v22_v11 }
  0x29   :  { %65 = vmatmul.f32.gmra.mxu0 %v27_v23  ;;  %652 = vmatpush.msrb.mxu2 %v18_v25 }
  0x2a   :  { %682 = vmatpush.msrb.mxu0 %v21_v13 }
  0x2c   :  { %683 = vmatpush.msrb.mxu0 %v20_v15 }
  0x2e   :  { %684 = vmatpush.msrb.mxu0 %v19_v24 }
  0x30   :  { %685 = vmatpush.msrb.mxu0 %v18_v25 }
  0x32   :  { %907 = vmatpush.msra.mxu0 %v25_v6  ;;  %v169_v6 = vld [vmem:[%s3403_s1 + $0x38] sm:$0xff] }
  0x34   :  { %908 = vmatpush.msra.mxu0 %v24_v7 }
  0x36   :  { %909 = vmatpush.msra.mxu0 %v23_v9 }
  0x38   :  { %910 = vmatpush.msra.mxu0 %v22_v11 }
  0x3a   :  { %911 = vmatpush.msra.mxu0 %v21_v13 }
  0x3c   :  { %912 = vmatpush.msra.mxu0 %v20_v15 }
  0x3e   :  { %913 = vmatpush.msra.mxu0 %v19_v24 }
  0x40   :  { %914 = vmatpush.msra.mxu0 %v18_v25 }
  0x9e   :  { %v63_v27 = vpop.f32.mrf.mxu0 }
  0x9f   :  { %v2065_v28 = vadd.f32 %v1854_v26, %v63_v27 }
  0xa1   :  { %1791 = vmatmul.msk.f32.vlgmr.msra.gmra.mxu1 %vm69_vm0, %v2065_v28 }
  0xa6   :  { %v66_v29 = vpop.f32.mrf.mxu0 }
  0xa7   :  { %v2069_v30 = vadd.f32 %v1854_v26, %v66_v29 }
  0xa9   :  { %1792 = vmatmul.msk.f32.gmra.mxu1 %vm69_vm0, %v2069_v30 }
 0x11e   :  { %v93_v31 = vpop.f32.mrf.mxu1 }
 0x11f   :  { %v99_v32 = vsub.f32 %v2065_v28, %v93_v31 }
 0x121   :  { %v101_v33 = vmul.f32 %v99_v32, %v99_v32 }
 0x123   :  { %1793 = vmatmul.msk.f32.vlgmr.msra.gmra.mxu2 %vm69_vm0, %v101_v33 }
 0x126   :  { %v96_v34 = vpop.f32.mrf.mxu1 }
 0x127   :  { %v100_v35 = vsub.f32 %v2069_v30, %v96_v34 }
 0x129   :  { %v102_v36 = vmul.f32 %v100_v35, %v100_v35 }
 0x12b   :  { %1794 = vmatmul.msk.f32.gmra.mxu2 %vm69_vm0, %v102_v36  ;;  %v174_v36 = vld [vmem:[%s3404_s2 + $0x100] sm:$0xff] }
 0x1a6   :  { %v126_v37 = vpop.f32.mrf.mxu2 }
 0x1a7   :  { %v127_v38 = vadd.f32 1e-05, %v126_v37 }
 0x1a9   :  { %1868 = vrsqrt.f32 %v127_v38  ;;  %vm138_vm2 = vweird.f32 %v127_v38 }
 0x1ae   :  { %v129_v39 = vpop.f32.mrf.mxu2 }
 0x1af   :  { %v1869_v40 = vpop.eup %1868  ;;  %v130_v41 = vadd.f32 1e-05, %v129_v39 }
 0x1b0   :  { %v133_v42 = vmul.f32 %v1869_v40, %v127_v38  ;;  %vm139_vm1 = vweird.f32 %v1869_v40 }
 0x1b1   :  { %1870 = vrsqrt.f32 %v130_v41  ;;  %vm140_vm3 = vmor %vm138_vm2, %vm139_vm1  ;;  %vm148_vm5 = vweird.f32 %v130_v41 }
 0x1b2   :  { %v134_v43 = vmul.f32 %v1869_v40, %v133_v42 }
 0x1b4   :  { %v135_v44 = vmul.f32 0.5, %v134_v43 }
 0x1b6   :  { %v136_v45 = vsub.f32 1.5, %v135_v44 }
 0x1b7   :  { %v1871_v46 = vpop.eup %1870 }
 0x1b8   :  { %v143_v47 = vmul.f32 %v1871_v46, %v130_v41  ;;  %v137_v48 = vmul.f32 %v1869_v40, %v136_v45  ;;  %vm149_vm4 = vweird.f32 %v1871_v46 }
 0x1b9   :  { %vm150_vm6 = vmor %vm148_vm5, %vm149_vm4 }
 0x1ba   :  { %v144_v49 = vmul.f32 %v1871_v46, %v143_v47  ;;  %v141_v52 = vsel %vm140_vm3, %v1869_v40, %v137_v48 }
 0x1bb   :  { %v152_v55 = vmul.f32 %v141_v52, %v99_v32 }
 0x1bc   :  { %v145_v50 = vmul.f32 0.5, %v144_v49 }
 0x1bd   :  { %v156_v60 = vmul.f32 %v1855_v54, %v152_v55 }
 0x1be   :  { %v146_v51 = vsub.f32 1.5, %v145_v50 }
 0x1bf   :  { %v160_v62 = vadd.f32 %v1856_v59, %v156_v60 }
 0x1c0   :  { %v147_v53 = vmul.f32 %v1871_v46, %v146_v51 }
 0x1c2   :  { %v151_v56 = vsel %vm150_vm6, %v1871_v46, %v147_v53  ;;  %v175_v53 = vld [vmem:[%s3404_s2 + $0x108] sm:$0xff] }
 0x1c3   :  { %v153_v57 = vmul.f32 %v151_v56, %v100_v35 }
 0x1c5   :  { %v157_v58 = vmul.f32 %v1855_v54, %v153_v57 }
 0x1c7   :  { %v161_v61 = vadd.f32 %v1856_v59, %v157_v58 }
 0x1c9   :  { %217 = vmatpush.msra.mxu3 %v161_v61 }
 0x1cb   :  { %218 = vmatpush.msra.mxu3 %v160_v62 }
 0x1cc   :  { %1795 = vmatmul.msk.f32.vlgmr.msra.gmra.mxu3 %vm178_vm7, %v162_v63 }
 0x1d4   :  { %1796 = vmatmul.msk.f32.gmra.mxu3 %vm178_vm7, %v163_v0 }
 0x1dc   :  { %1797 = vmatmul.msk.f32.gmra.mxu3 %vm178_vm7, %v164_v1 }
 0x1e4   :  { %1798 = vmatmul.msk.f32.gmra.mxu3 %vm178_vm7, %v165_v2 }
 0x1ec   :  { %1799 = vmatmul.msk.f32.gmra.mxu3 %vm178_vm7, %v166_v3 }
 0x1f4   :  { %1800 = vmatmul.msk.f32.gmra.mxu3 %vm178_vm7, %v167_v4 }
 0x1fc   :  { %1801 = vmatmul.msk.f32.gmra.mxu3 %vm178_vm7, %v168_v5 }
 0x204   :  { %1802 = vmatmul.msk.f32.gmra.mxu3 %vm178_vm7, %v169_v6 }
 0x24f   :  { %v220_v7 = vpop.f32.mrf.mxu3 }
 0x250   :  { %v2131_v15 = vadd.f32 %v220_v7, %v170_v12 }
 0x252   :  { %v2138_v19 = vmul.f32 0.70710677, %v2131_v15 }
 0x254   :  { %v260_v24 = vmul.f32 %v2138_v19, %v2138_v19 }
 0x256   :  { %v2156_v32 = vmin.f32 %v260_v24, 16.0 }
 0x257   :  { %v223_v9 = vpop.f32.mrf.mxu3 }
 0x258   :  { %v2118_v10 = vadd.f32 %v223_v9, %v171_v8  ;;  %v262_v39 = vmul.f32 2.1237322e-06, %v2156_v32 }
 0x25a   :  { %v2121_v11 = vmul.f32 0.70710677, %v2118_v10  ;;  %v263_v48 = vadd.f32 0.00028619796, %v262_v39 }
 0x25c   :  { %v300_v13 = vmul.f32 %v2121_v11, %v2121_v11  ;;  %v264_v58 = vmul.f32 %v263_v48, %v2156_v32 }
 0x25e   :  { %v2135_v18 = vmin.f32 %v300_v13, 16.0  ;;  %v265_v6 = vadd.f32 0.0036580483, %v264_v58 }
 0x25f   :  { %v226_v16 = vpop.f32.mrf.mxu3 }
 0x260   :  { %v2133_v17 = vadd.f32 %v226_v16, %v172_v14  ;;  %v313_v23 = vmul.f32 3.8918573e-05, %v2135_v18  ;;  %v302_v25 = vmul.f32 2.1237322e-06, %v2135_v18  ;;  %v176_v14 = vld [vmem:[%s3404_s2 + $0x110] sm:$0xff] }
 0x262   :  { %v2141_v20 = vmul.f32 0.70710677, %v2133_v17  ;;  %v314_v31 = vadd.f32 0.001143296, %v313_v23  ;;  %v303_v33 = vadd.f32 0.00028619796, %v302_v25 }
 0x264   :  { %v340_v21 = vmul.f32 %v2141_v20, %v2141_v20  ;;  %v315_v38 = vmul.f32 %v314_v31, %v2135_v18  ;;  %v304_v40 = vmul.f32 %v303_v33, %v2135_v18 }
 0x266   :  { %v2154_v29 = vmin.f32 %v340_v21, 16.0  ;;  %v316_v46 = vadd.f32 0.014752088, %v315_v38  ;;  %v305_v49 = vadd.f32 0.0036580483, %v304_v40 }
 0x267   :  { %v229_v26 = vpop.f32.mrf.mxu3 }
 0x268   :  { %v2152_v27 = vadd.f32 %v229_v26, %v173_v22  ;;  %v353_v37 = vmul.f32 3.8918573e-05, %v2154_v29  ;;  %v342_v51 = vmul.f32 2.1237322e-06, %v2154_v29  ;;  %v317_v56 = vmul.f32 %v316_v46, %v2135_v18 }
 0x269   :  { %v306_v59 = vmul.f32 %v305_v49, %v2135_v18  ;;  %v266_v26 = vmul.f32 %v265_v6, %v2156_v32 }
 0x26a   :  { %v2159_v34 = vmul.f32 0.70710677, %v2152_v27  ;;  %v354_v45 = vadd.f32 0.001143296, %v353_v37  ;;  %v343_v62 = vadd.f32 0.00028619796, %v342_v51 }
 0x26b   :  { %v318_v2 = vadd.f32 0.112945676, %v317_v56  ;;  %v307_v7 = vadd.f32 0.05243302, %v306_v59 }
 0x26c   :  { %v380_v35 = vmul.f32 %v2159_v34, %v2159_v34  ;;  %v355_v55 = vmul.f32 %v354_v45, %v2154_v29  ;;  %v344_v12 = vmul.f32 %v343_v62, %v2154_v29 }
 0x26d   :  { %v319_v25 = vmul.f32 %v318_v2, %v2135_v18  ;;  %v308_v31 = vmul.f32 %v307_v7, %v2135_v18 }
 0x26e   :  { %v2170_v41 = vmin.f32 %v380_v35, 16.0  ;;  %v356_v1 = vadd.f32 0.014752088, %v355_v55  ;;  %v345_v37 = vadd.f32 0.0036580483, %v344_v12 }
 0x26f   :  { %v232_v42 = vpop.f32.mrf.mxu3  ;;  %v320_v49 = vadd.f32 0.4994258, %v319_v25 }
 0x270   :  { %v2172_v43 = vadd.f32 %v232_v42, %v174_v36  ;;  %v393_v44 = vmul.f32 3.8918573e-05, %v2170_v41  ;;  %v382_v3 = vmul.f32 2.1237322e-06, %v2170_v41  ;;  %v357_v21 = vmul.f32 %v356_v1, %v2154_v29 }
 0x271   :  { %v346_v55 = vmul.f32 %v345_v37, %v2154_v29 }
 0x272   :  { %v2176_v47 = vmul.f32 0.70710677, %v2172_v43  ;;  %v394_v50 = vadd.f32 0.001143296, %v393_v44  ;;  %v383_v22 = vadd.f32 0.00028619796, %v382_v3 }
 0x273   :  { %v358_v44 = vadd.f32 0.112945676, %v357_v21  ;;  %v347_v12 = vadd.f32 0.05243302, %v346_v55 }
 0x274   :  { %v420_v52 = vmul.f32 %v2176_v47, %v2176_v47  ;;  %v395_v54 = vmul.f32 %v394_v50, %v2170_v41  ;;  %v384_v45 = vmul.f32 %v383_v22, %v2170_v41  ;;  %v2220_v50 = vadd.f32 0.05243302, %v266_v26 }
 0x275   :  { %v359_v62 = vmul.f32 %v358_v44, %v2154_v29 }
 0x276   :  { %v2187_v57 = vmin.f32 %v420_v52, 16.0  ;;  %v396_v61 = vadd.f32 0.014752088, %v395_v54  ;;  %v2226_v54 = vadd.f32 0.18741608, %v308_v31 }
 0x277   :  { %v235_v60 = vpop.f32.mrf.mxu3  ;;  %v385_v1 = vadd.f32 0.0036580483, %v384_v45  ;;  %v360_v25 = vadd.f32 0.4994258, %v359_v62 }
 0x278   :  { %v2191_v63 = vadd.f32 %v235_v60, %v175_v53  ;;  %v433_v0 = vmul.f32 3.8918573e-05, %v2187_v57  ;;  %v422_v4 = vmul.f32 2.1237322e-06, %v2187_v57  ;;  %v397_v9 = vmul.f32 %v396_v61, %v2170_v41  ;;  %v177_v60 = vld [vmem:[%s3404_s2 + $0x118] sm:$0xff] }
 0x279   :  { %v386_v26 = vmul.f32 %v385_v1, %v2170_v41 }
 0x27a   :  { %v2197_v5 = vmul.f32 0.70710677, %v2191_v63  ;;  %v434_v8 = vadd.f32 0.001143296, %v433_v0  ;;  %v423_v23 = vadd.f32 0.00028619796, %v422_v4  ;;  %v321_v4 = vmul.f32 %v320_v49, %v2135_v18 }
 0x27b   :  { %v398_v36 = vadd.f32 0.112945676, %v397_v9  ;;  %v273_v0 = vmul.f32 3.8918573e-05, %v2156_v32  ;;  %v387_v55 = vadd.f32 0.05243302, %v386_v26 }
 0x27c   :  { %v460_v13 = vmul.f32 %v2197_v5, %v2197_v5  ;;  %v435_v16 = vmul.f32 %v434_v8, %v2187_v57  ;;  %v424_v46 = vmul.f32 %v423_v23, %v2187_v57 }
 0x27d   :  { %v399_v53 = vmul.f32 %v398_v36, %v2170_v41 }
 0x27e   :  { %v2208_v24 = vmin.f32 %v460_v13, 16.0  ;;  %v436_v35 = vadd.f32 0.014752088, %v435_v16  ;;  %v425_v2 = vadd.f32 0.0036580483, %v424_v46 }
 0x27f   :  { %v238_v33 = vpop.f32.mrf.mxu3  ;;  %v400_v9 = vadd.f32 0.4994258, %v399_v53  ;;  %v274_v46 = vadd.f32 0.001143296, %v273_v0  ;;  %v361_v53 = vmul.f32 %v360_v25, %v2154_v29 }
 0x280   :  { %v462_v38 = vmul.f32 2.1237322e-06, %v2208_v24  ;;  %v2214_v39 = vadd.f32 %v238_v33, %v176_v14  ;;  %v473_v40 = vmul.f32 3.8918573e-05, %v2208_v24  ;;  %v437_v42 = vmul.f32 %v436_v35, %v2187_v57 }
 0x281   :  { %v426_v31 = vmul.f32 %v425_v2, %v2187_v57  ;;  %v2250_v35 = vadd.f32 1.0, %v321_v4 }
 0x282   :  { %v463_v48 = vadd.f32 0.00028619796, %v462_v38  ;;  %v2223_v51 = vmul.f32 0.70710677, %v2214_v39  ;;  %v474_v52 = vadd.f32 0.001143296, %v473_v40  ;;  %v401_v40 = vmul.f32 %v400_v9, %v2170_v41 }
 0x283   :  { %v438_v58 = vadd.f32 0.112945676, %v437_v42  ;;  %v348_v42 = vmul.f32 %v347_v12, %v2154_v29  ;;  %1872 = vrcp.f32 %v2250_v35  ;;  %v2274_v9 = vadd.f32 1.0, %v361_v53 }
 0x284   :  { %v464_v56 = vmul.f32 %v463_v48, %v2208_v24  ;;  %v500_v59 = vmul.f32 %v2223_v51, %v2223_v51  ;;  %v475_v61 = vmul.f32 %v474_v52, %v2208_v24  ;;  %v2268_v0 = vadd.f32 1.0, %v401_v40 }
 0x285   :  { %v439_v3 = vmul.f32 %v438_v58, %v2187_v57  ;;  %v349_v1 = vadd.f32 0.18741608, %v348_v42  ;;  %vm368_vm2 = vweird.f32 %v2274_v9 }
 0x286   :  { %v2240_v6 = vmin.f32 %v500_v59, 16.0  ;;  %v476_v8 = vadd.f32 0.014752088, %v475_v61  ;;  %v465_v13 = vadd.f32 0.0036580483, %v464_v56  ;;  %vm408_vm9 = vweird.f32 %v2268_v0 }
 0x287   :  { %v241_v7 = vpop.f32.mrf.mxu3  ;;  %v440_v16 = vadd.f32 0.4994258, %v439_v3  ;;  %v427_v56 = vadd.f32 0.05243302, %v426_v31 }
 0x288   :  { %v2242_v14 = vadd.f32 %v241_v7, %v177_v60  ;;  %v502_v21 = vmul.f32 2.1237322e-06, %v2240_v6  ;;  %v513_v22 = vmul.f32 3.8918573e-05, %v2240_v6  ;;  %v477_v23 = vmul.f32 %v476_v8, %v2208_v24 }
 0x289   :  { %v441_v33 = vmul.f32 %v440_v16, %v2187_v57  ;;  %v466_v44 = vmul.f32 %v465_v13, %v2208_v24  ;;  %v428_v12 = vmul.f32 %v427_v56, %v2187_v57 }
 0x28a   :  { %v503_v36 = vadd.f32 0.00028619796, %v502_v21  ;;  %v2253_v37 = vmul.f32 0.70710677, %v2242_v14  ;;  %v514_v38 = vadd.f32 0.001143296, %v513_v22  ;;  %v388_v21 = vmul.f32 %v387_v55, %v2170_v41 }
 0x28b   :  { %v478_v45 = vadd.f32 0.112945676, %v477_v23  ;;  %v2264_v59 = vadd.f32 1.0, %v441_v33  ;;  %v467_v2 = vadd.f32 0.05243302, %v466_v44  ;;  %v275_v33 = vmul.f32 %v274_v46, %v2156_v32  ;;  %v2291_v44 = vpop.eup %1872 }
 0x28c   :  { %v504_v48 = vmul.f32 %v503_v36, %v2240_v6  ;;  %v540_v49 = vmul.f32 %v2253_v37, %v2253_v37  ;;  %v515_v52 = vmul.f32 %v514_v38, %v2240_v6  ;;  %v310_v36 = vmul.f32 %v2226_v54, %v2135_v18 }
 0x28d   :  { %v479_v58 = vmul.f32 %v478_v45, %v2208_v24  ;;  %1874 = vrcp.f32 %v2264_v59  ;;  %v468_v25 = vmul.f32 %v467_v2, %v2208_v24  ;;  %v350_v38 = vmul.f32 %v349_v1, %v2154_v29 }
 0x28e   :  { %v505_v60 = vadd.f32 0.0036580483, %v504_v48  ;;  %v2266_v61 = vmin.f32 %v540_v49, 16.0  ;;  %v516_v62 = vadd.f32 0.014752088, %v515_v52  ;;  %1876 = vrcp.f32 %v2268_v0 }
 0x28f   :  { %v480_v3 = vadd.f32 0.4994258, %v479_v58  ;;  %v429_v45 = vadd.f32 0.18741608, %v428_v12  ;;  %v389_v52 = vadd.f32 0.18741608, %v388_v21  ;;  %v2302_v58 = vmul.f32 %v2220_v50, %v2156_v32 }
 0x290   :  { %v542_v4 = vmul.f32 2.1237322e-06, %v2266_v61  ;;  %v553_v7 = vmul.f32 3.8918573e-05, %v2266_v61  ;;  %v517_v8 = vmul.f32 %v516_v62, %v2240_v6  ;;  %v506_v13 = vmul.f32 %v505_v60, %v2240_v6 }
 0x291   :  { %v481_v16 = vmul.f32 %v480_v3, %v2208_v24  ;;  %v469_v29 = vadd.f32 0.18741608, %v468_v25  ;;  %v276_v55 = vadd.f32 0.014752088, %v275_v33  ;;  %v2304_v60 = vadd.f32 1.1283791, %v310_v36 }
 0x292   :  { %v543_v22 = vadd.f32 0.00028619796, %v542_v4  ;;  %v554_v23 = vadd.f32 0.001143296, %v553_v7  ;;  %v518_v26 = vadd.f32 0.112945676, %v517_v8  ;;  %v430_v3 = vmul.f32 %v429_v45, %v2187_v57 }
 0x293   :  { %v2283_v31 = vadd.f32 1.0, %v481_v16  ;;  %v507_v48 = vadd.f32 0.05243302, %v506_v13  ;;  %v2296_v18 = vpop.eup %1874  ;;  %v2308_v2 = vadd.f32 1.1283791, %v350_v38  ;;  %v390_v8 = vmul.f32 %v389_v52, %v2170_v41 }
 0x294   :  { %v544_v40 = vmul.f32 %v543_v22, %v2266_v61  ;;  %v555_v42 = vmul.f32 %v554_v23, %v2266_v61  ;;  %v519_v49 = vmul.f32 %v518_v26, %v2240_v6  ;;  %v2298_v56 = vpop.eup %1876  ;;  %v444_v50 = vmul.f32 %v2296_v18, %v2264_v59 }
 0x295   :  { %1878 = vrcp.f32 %v2283_v31  ;;  %v508_v4 = vmul.f32 %v507_v48, %v2240_v6  ;;  %v374_v13 = vand.u32 2147483648, %v2274_v9  ;;  %v470_v21 = vmul.f32 %v469_v29, %v2208_v24 }
 0x296   :  { %v545_v53 = vadd.f32 0.0036580483, %v544_v40  ;;  %v556_v46 = vadd.f32 0.014752088, %v555_v42  ;;  %1880 = vrcp.f32 %v2274_v9  ;;  %v520_v54 = vadd.f32 0.4994258, %v519_v49 }
 0x297   :  { %v404_v57 = vmul.f32 %v2298_v56, %v2268_v0  ;;  %v2325_v23 = vmul.f32 %v276_v55, %v2156_v32  ;;  %v2334_v36 = vmul.f32 %v2291_v44, %v2250_v35  ;;  %v431_v24 = vadd.f32 1.1283791, %v430_v3 }
 0x298   :  { %v546_v62 = vmul.f32 %v545_v53, %v2266_v61  ;;  %v557_v1 = vmul.f32 %v556_v46, %v2266_v61  ;;  %v521_v7 = vmul.f32 %v520_v54, %v2240_v6  ;;  %v509_v38 = vadd.f32 0.18741608, %v508_v4 }
 0x299   :  { %v372_v40 = vand.u32 2147483647, %v2274_v9  ;;  %v2338_v42 = vadd.f32 1.1283791, %v390_v8  ;;  %v445_v48 = vsub.f32 1.0, %v444_v50  ;;  %v2340_v49 = vor.u32 1.1754944e-38, %v374_v13 }
 0x29a   :  { %v558_v12 = vadd.f32 0.112945676, %v557_v1  ;;  %v2320_v22 = vadd.f32 1.0, %v521_v7  ;;  %v547_v41 = vadd.f32 0.05243302, %v546_v62  ;;  %v454_v53 = vand.u32 2147483648, %v2264_v59 }
 0x29b   :  { %v2317_v16 = vpop.eup %1878  ;;  %v471_v52 = vadd.f32 1.1283791, %v470_v21  ;;  %v405_v46 = vsub.f32 1.0, %v404_v57  ;;  %v452_v1 = vand.u32 2147483647, %v2264_v59  ;;  %v2349_v3 = vmul.f32 %v431_v24, %v2176_v47 }
 0x29c   :  { %v2327_v25 = vpop.eup %1880  ;;  %v559_v26 = vmul.f32 %v558_v12, %v2266_v61  ;;  %v484_v33 = vmul.f32 %v2317_v16, %v2283_v31  ;;  %1882 = vrcp.f32 %v2320_v22  ;;  %v548_v54 = vmul.f32 %v547_v41, %v2266_v61 }
 0x29d   :  { %v364_v29 = vmul.f32 %v2327_v25, %v2274_v9  ;;  %v510_v4 = vmul.f32 %v509_v38, %v2240_v6  ;;  %vm448_vm8 = vweird.f32 %v2264_v59  ;;  %v412_v7 = vand.u32 2147483647, %v2268_v0 }
 0x29e   :  { %v560_v45 = vadd.f32 0.4994258, %v559_v26  ;;  %v485_v62 = vsub.f32 1.0, %v484_v33  ;;  %v492_v12 = vand.u32 2147483647, %v2283_v31  ;;  %v494_v50 = vand.u32 2147483648, %v2283_v31 }
 0x29f   :  { %v446_v13 = vmul.f32 %v2296_v18, %v445_v48  ;;  %v2361_v47 = vmul.f32 %v471_v52, %v2197_v5  ;;  %v455_v57 = vor.u32 1.1754944e-38, %v454_v53  ;;  %v406_v6 = vmul.f32 %v2298_v56, %v405_v46 }
 0x2a0   :  { %v561_v55 = vmul.f32 %v560_v45, %v2266_v61  ;;  %vm409_vm10 = vweird.f32 %v2298_v56  ;;  %v549_v41 = vadd.f32 0.18741608, %v548_v54  ;;  %v486_v26 = vmul.f32 %v2317_v16, %v485_v62 }
 0x2a1   :  { %vm488_vm11 = vweird.f32 %v2283_v31  ;;  %vm2368_vm12 = vcmp.eq.f32.partialorder %v452_v1, 8.507059e+37  ;;  %v511_v24 = vadd.f32 1.1283791, %v510_v4  ;;  %vm449_vm13 = vweird.f32 %v2296_v18  ;;  %vm2408_vm6 = vmor %vm408_vm9, %vm409_vm10 }
 0x2a2   :  { %v2355_v8 = vadd.f32 1.0, %v561_v55  ;;  %v1883_v21 = vpop.eup %1882  ;;  %v414_v38 = vand.u32 2147483648, %v2268_v0  ;;  %vm2375_vm14 = vcmp.eq.f32.partialorder %v492_v12, 8.507059e+37  ;;  %v495_v48 = vor.u32 1.1754944e-38, %v494_v50  ;;  %vm2396_vm4 = vmor %vm448_vm8, %vm449_vm13 }
 0x2a3   :  { %v524_v5 = vmul.f32 %v1883_v21, %v2320_v22  ;;  %v447_v52 = vadd.f32 %v2296_v18, %v446_v13  ;;  %v365_v53 = vsub.f32 1.0, %v364_v29  ;;  %vm369_vm15 = vweird.f32 %v2327_v25 }
 0x2a4   :  { %1884 = vrcp.f32 %v2355_v8  ;;  %v532_v54 = vand.u32 2147483647, %v2320_v22  ;;  %v534_v55 = vand.u32 2147483648, %v2320_v22  ;;  %v2384_v62 = vadd.f32 %v2298_v56, %v406_v6 }
 0x2a5   :  { %v525_v46 = vsub.f32 1.0, %v524_v5  ;;  %v550_v1 = vmul.f32 %v549_v41, %v2266_v61  ;;  %v487_v4 = vadd.f32 %v2317_v16, %v486_v26  ;;  %vm489_vm1 = vweird.f32 %v2317_v16 }
 0x2a6   :  { %v325_v29 = vsub.f32 1.0, %v2334_v36  ;;  %v512_v12 = vmul.f32 %v511_v24, %v2223_v51  ;;  %vm529_vm3 = vweird.f32 %v1883_v21  ;;  %v415_v61 = vor.u32 1.1754944e-38, %v414_v38  ;;  %vm2423_vm9 = vmor %vm488_vm11, %vm489_vm1 }
 0x2a7   :  { %v526_v50 = vmul.f32 %v1883_v21, %v525_v46  ;;  %vm528_vm5 = vweird.f32 %v2320_v22  ;;  %v451_v36 = vsel %vm2396_vm4, %v2296_v18, %v447_v52  ;;  %v366_v59 = vmul.f32 %v2327_v25, %v365_v53  ;;  %vm2464_vm4 = vmor %vm368_vm2, %vm369_vm15 }
 0x2a8   :  { %v278_v41 = vadd.f32 0.112945676, %v2325_v23  ;;  %vm2415_vm8 = vcmp.eq.f32.partialorder %v532_v54, 8.507059e+37  ;;  %v535_v18 = vor.u32 1.1754944e-38, %v534_v55  ;;  %vm2427_vm10 = vcmp.eq.f32.partialorder %v412_v7, 8.507059e+37  ;;  %vm530_vm13 = vmor %vm528_vm5, %vm529_vm3 }
 0x2a9   :  { %v527_v24 = vadd.f32 %v1883_v21, %v526_v50  ;;  %v551_v23 = vadd.f32 1.1283791, %v550_v1  ;;  %v491_v38 = vsel %vm2423_vm9, %v2317_v16, %v487_v4  ;;  %v411_v31 = vsel %vm2408_vm6, %v2298_v56, %v2384_v62 }
 0x2aa   :  { %v1885_v6 = vpop.eup %1884  ;;  %v326_v52 = vmul.f32 %v2291_v44, %v325_v29  ;;  %v456_v7 = vsel %vm2368_vm12, %v455_v57, %v451_v36  ;;  %vm2444_vm11 = vcmp.eq.f32.partialorder %v372_v40, 8.507059e+37  ;;  %v279_v16 = vmul.f32 %v278_v41, %v2156_v32 }
 0x2ab   :  { %v564_v26 = vmul.f32 %v1885_v6, %v2355_v8  ;;  %v531_v46 = vsel %vm530_vm13, %v1883_v21, %v527_v24  ;;  %v572_v55 = vand.u32 2147483647, %v2355_v8  ;;  %v574_v1 = vand.u32 2147483648, %v2355_v8 }
 0x2ac   :  { %v536_v56 = vsel %vm2415_vm8, %v535_v18, %v531_v46  ;;  %v367_v21 = vadd.f32 %v2327_v25, %v366_v59  ;;  %vm569_vm1 = vweird.f32 %v1885_v6  ;;  %v496_v57 = vsel %vm2375_vm14, %v495_v48, %v491_v38 }
 0x2ad   :  { %v565_v53 = vsub.f32 1.0, %v564_v26  ;;  %v280_v40 = vadd.f32 0.4994258, %v279_v16  ;;  %v552_v33 = vmul.f32 %v551_v23, %v2253_v37  ;;  %vm568_vm12 = vweird.f32 %v2355_v8 }
 0x2ae   :  { %v327_v4 = vadd.f32 %v2291_v44, %v326_v52  ;;  %vm328_vm3 = vweird.f32 %v2250_v35  ;;  %v537_v50 = vmul.f32 %v536_v56, %v512_v12  ;;  %vm329_vm14 = vweird.f32 %v2291_v44  ;;  %vm570_vm5 = vmor %vm568_vm12, %vm569_vm1 }
 0x2af   :  { %v566_v62 = vmul.f32 %v1885_v6, %v565_v53  ;;  %v281_v37 = vmul.f32 %v280_v40, %v2156_v32  ;;  %vm573_vm6 = vcmp.eq.f32.partialorder %v572_v55, 8.507059e+37  ;;  %v575_v8 = vor.u32 1.1754944e-38, %v574_v1  ;;  %vm2487_vm15 = vmor %vm328_vm3, %vm329_vm14 }
 0x2b0   :  { %v497_v45 = vmul.f32 %v496_v57, %v2361_v47  ;;  %v334_v48 = vand.u32 2147483648, %v2250_v35  ;;  %v371_v9 = vsel %vm2464_vm4, %v2327_v25, %v367_v21  ;;  %v332_v36 = vand.u32 2147483647, %v2250_v35 }
 0x2b1   :  { %v567_v29 = vadd.f32 %v1885_v6, %v566_v62  ;;  %v2476_v51 = vadd.f32 1.0, %v281_v37  ;;  %v392_v59 = vmul.f32 %v2338_v42, %v2159_v34  ;;  %v457_v26 = vmul.f32 %v456_v7, %v2349_v3 }
 0x2b2   :  { %v416_v47 = vsel %vm2427_vm10, %v415_v61, %v411_v31  ;;  %v1809_v24 = vclamps-f32 %v537_v50, 1.0  ;;  %v331_v34 = vsel %vm2487_vm15, %v2291_v44, %v327_v4  ;;  %v352_v42 = vmul.f32 %v2308_v2, %v2141_v20 }
 0x2b3   :  { %v571_v12 = vsel %vm570_vm5, %v1885_v6, %v567_v29  ;;  %1886 = vrcp.f32 %v2476_v51  ;;  %v376_v3 = vsel %vm2444_vm11, %v2340_v49, %v371_v9  ;;  %v335_v35 = vor.u32 1.1754944e-38, %v334_v48 }
 0x2b4   :  { %v576_v41 = vsel %vm573_vm6, %v575_v8, %v571_v12  ;;  %v1808_v22 = vclamps-f32 %v497_v45, 1.0  ;;  %v417_v18 = vmul.f32 %v416_v47, %v392_v59  ;;  %vm333_vm2 = vcmp.eq.f32.partialorder %v332_v36, 8.507059e+37  ;;  %v598_v47 = vld [vmem:[%s3404_s2 + $0x130] sm:$0xff] }
 0x2b5   :  { %v577_v25 = vmul.f32 %v576_v41, %v552_v33  ;;  %v269_v0 = vadd.f32 0.18741608, %v2302_v58  ;;  %v312_v5 = vmul.f32 %v2304_v60, %v2121_v11  ;;  %v251_v44 = vmul.f32 0.5, %v2242_v14 }
 0x2b6   :  { %v336_v23 = vsel %vm333_vm2, %v335_v35, %v331_v34  ;;  %v586_v31 = vadd.f32 1.0, %v1809_v24  ;;  %v1807_v20 = vclamps-f32 %v457_v26, 1.0  ;;  %v377_v2 = vmul.f32 %v376_v3, %v352_v42  ;;  %v599_v24 = vld [vmem:[%s3404_s2 + $0x138] sm:$0xff] }
 0x2b7   :  { %v1810_v61 = vclamps-f32 %v577_v25, 1.0  ;;  %v250_v52 = vmul.f32 0.5, %v2214_v39  ;;  %v585_v46 = vadd.f32 1.0, %v1808_v22  ;;  %v1806_v7 = vclamps-f32 %v417_v18, 1.0 }
 0x2b8   :  { %v337_v54 = vmul.f32 %v336_v23, %v312_v5  ;;  %v270_v16 = vmul.f32 %v269_v0, %v2156_v32  ;;  %v249_v11 = vmul.f32 0.5, %v2191_v63  ;;  %v584_v60 = vadd.f32 1.0, %v1807_v20  ;;  %v729_v5 = vld [vmem:[%s3405_s3 + $0x30] sm:$0xff]  ;;  %v726_v20 = vld [vmem:[%s3405_s3 + $0x18] sm:$0xff] }
 0x2b9   :  { %v587_v38 = vadd.f32 1.0, %v1810_v61  ;;  %v1887_v49 = vpop.eup %1886  ;;  %v594_v14 = vmul.f32 %v586_v31, %v250_v52  ;;  %v1805_v55 = vclamps-f32 %v377_v2, 1.0  ;;  %v248_v1 = vmul.f32 0.5, %v2172_v43  ;;  %v725_v2 = vld [vmem:[%s3405_s3 + $0x10] sm:$0xff]  ;;  %v724_v52 = vld [vmem:[%s3405_s3 + $0x8] sm:$0xff] }
 0x2ba   :  { %v284_v58 = vmul.f32 %v1887_v49, %v2476_v51  ;;  %v593_v39 = vmul.f32 %v585_v46, %v249_v11  ;;  %v583_v21 = vadd.f32 1.0, %v1806_v7  ;;  %v1804_v62 = vclamps-f32 %v337_v54, 1.0 }
 0x2bb   :  { %v595_v53 = vmul.f32 %v587_v38, %v251_v44  ;;  %v294_v57 = vand.u32 2147483648, %v2476_v51  ;;  %v271_v40 = vadd.f32 1.1283791, %v270_v16  ;;  %vm289_vm8 = vweird.f32 %v1887_v49  ;;  %v728_v44 = vld [vmem:[%s3405_s3 + $0x28] sm:$0xff]  ;;  %v727_v38 = vld [vmem:[%s3405_s3 + $0x20] sm:$0xff] }
 0x2bc   :  { %v285_v56 = vsub.f32 1.0, %v284_v58  ;;  %v292_v32 = vand.u32 2147483647, %v2476_v51  ;;  %v247_v63 = vmul.f32 0.5, %v2152_v27  ;;  %v592_v4 = vmul.f32 %v584_v60, %v248_v1  ;;  %v2576_v58 = vld [vmem:[%s3404_s2 + $0xc0] sm:$0xff] }
 0x2bd   :  { %614 = vmatpush.msrb.mxu1 %v595_v53  ;;  %v582_v29 = vadd.f32 1.0, %v1805_v55  ;;  %vm288_vm9 = vweird.f32 %v2476_v51  ;;  %v246_v43 = vmul.f32 0.5, %v2133_v17  ;;  %v581_v37 = vadd.f32 1.0, %v1804_v62  ;;  %v723_v53 = vld [vmem:[%s3405_s3] sm:$0xff]  ;;  %v2588_v55 = vld [vmem:[%s3404_s2 + $0xb0] sm:$0xff] }
 0x2be   :  { %v286_v33 = vmul.f32 %v1887_v49, %v285_v56  ;;  %v591_v13 = vmul.f32 %v583_v21, %v247_v63  ;;  %vm290_vm10 = vmor %vm288_vm9, %vm289_vm8  ;;  %v295_v8 = vor.u32 1.1754944e-38, %v294_v57  ;;  %v272_v45 = vmul.f32 %v271_v40, %v2138_v19  ;;  %v596_v19 = vld [vmem:[%s3404_s2 + $0x120] sm:$0xff]  ;;  %v2594_v21 = vld [vmem:[%s3404_s2 + $0xa8] sm:$0xff] }
 0x2bf   :  { %615 = vmatpush.msrb.mxu1 %v594_v14  ;;  %vm293_vm13 = vcmp.eq.f32.partialorder %v292_v32, 8.507059e+37  ;;  %v245_v12 = vmul.f32 0.5, %v2118_v10  ;;  %v590_v27 = vmul.f32 %v582_v29, %v246_v43  ;;  %v244_v17 = vmul.f32 0.5, %v2131_v15  ;;  %v597_v10 = vld [vmem:[%s3404_s2 + $0x128] sm:$0xff]  ;;  %v2582_v14 = vld [vmem:[%s3404_s2 + $0xb8] sm:$0xff] }
 0x2c0   :  { %v287_v50 = vadd.f32 %v1887_v49, %v286_v33  ;;  %v1857_v62 = vld [vmem:[%s3404_s2 + $0x140] ss:$0 sm:$0xff]  ;;  %v1858_v63 = vld [vmem:[%s3404_s2 + $0x148] ss:$0 sm:$0xff]  ;;  %v2612_v29 = vld [vmem:[%s3404_s2 + $0x98] sm:$0xff] }
 0x2c1   :  { %616 = vmatpush.msrb.mxu1 %v593_v39  ;;  %v589_v59 = vmul.f32 %v581_v37, %v245_v12  ;;  %v2603_v33 = vld [vmem:[%s3404_s2 + $0xa0] sm:$0xff] }
 0x2c2   :  { %v291_v48 = vsel %vm290_vm10, %v1887_v49, %v287_v50 }
 0x2c3   :  { %617 = vmatpush.msrb.mxu1 %v592_v4  ;;  %v296_v9 = vsel %vm293_vm13, %v295_v8, %v291_v48 }
 0x2c4   :  { %v297_v36 = vmul.f32 %v296_v9, %v272_v45  ;;  %v2624_v45 = vld [vmem:[%s3404_s2 + $0x88] sm:$0xff] }
 0x2c5   :  { %618 = vmatpush.msrb.mxu1 %v591_v13  ;;  %v2618_v13 = vld [vmem:[%s3404_s2 + $0x90] sm:$0xff] }
 0x2c6   :  { %v1803_v51 = vclamps-f32 %v297_v36, 1.0  ;;  %v1859_v36 = vld [vmem:[%s3405_s3 + $0x40] ss:$0 sm:$0xff] }
 0x2c7   :  { %619 = vmatpush.msrb.mxu1 %v590_v27 }
 0x2c8   :  { %v580_v41 = vadd.f32 1.0, %v1803_v51 }
 0x2c9   :  { %620 = vmatpush.msrb.mxu1 %v589_v59 }
 0x2ca   :  { %v588_v26 = vmul.f32 %v580_v41, %v244_v17 }
 0x2cc   :  { %621 = vmatpush.msrb.mxu1 %v588_v26 }
 0x2cd   :  { %1811 = vmatmul.msk.f32.vlgmr.msrb.gmra.mxu1 %vm69_vm0, %v596_v19 }
 0x2d5   :  { %1812 = vmatmul.msk.f32.gmra.mxu1 %vm69_vm0, %v597_v10 }
 0x34a   :  { %v623_v15 = vpop.f32.mrf.mxu1 }
 0x34b   :  { %v624_v6 = vadd.f32 %v623_v15, %v598_v47 }
 0x34d   :  { %v2529_v25 = vadd.f32 %v624_v6, %v2065_v28 }
 0x34f   :  { %1813 = vmatmul.msk.f32.vlgmr.msrb.gmra.mxu2 %vm69_vm0, %v2529_v25 }
 0x352   :  { %v626_v34 = vpop.f32.mrf.mxu1 }
 0x353   :  { %v627_v42 = vadd.f32 %v626_v34, %v599_v24 }
 0x355   :  { %v2537_v3 = vadd.f32 %v627_v42, %v2069_v30  ;;  %v730_v30 = vld [vmem:[%s3405_s3 + $0x38] sm:$0xff] }
 0x356   :  { %747 = vmatpush.msra.mxu1 %v730_v30 }
 0x357   :  { %1814 = vmatmul.msk.f32.gmra.mxu2 %vm69_vm0, %v2537_v3 }
 0x358   :  { %748 = vmatpush.msra.mxu1 %v729_v5 }
 0x35a   :  { %749 = vmatpush.msra.mxu1 %v728_v44  ;;  %v863_v44 = vld [vmem:[%s3404_s2 + $0x1b8] sm:$0xff] }
 0x35c   :  { %750 = vmatpush.msra.mxu1 %v727_v38 }
 0x35e   :  { %751 = vmatpush.msra.mxu1 %v726_v20  ;;  %v862_v20 = vld [vmem:[%s3404_s2 + $0x1b0] sm:$0xff] }
 0x360   :  { %752 = vmatpush.msra.mxu1 %v725_v2 }
 0x362   :  { %753 = vmatpush.msra.mxu1 %v724_v52 }
 0x364   :  { %754 = vmatpush.msra.mxu1 %v723_v53 }
 0x366   :  { %940 = vmatpush.msrb.mxu1 %v2576_v58 }
 0x368   :  { %941 = vmatpush.msrb.mxu1 %v2582_v14 }
 0x36a   :  { %942 = vmatpush.msrb.mxu1 %v2588_v55 }
 0x36c   :  { %943 = vmatpush.msrb.mxu1 %v2594_v21 }
 0x36e   :  { %944 = vmatpush.msrb.mxu1 %v2603_v33 }
 0x370   :  { %945 = vmatpush.msrb.mxu1 %v2612_v29 }
 0x372   :  { %946 = vmatpush.msrb.mxu1 %v2618_v13 }
 0x374   :  { %947 = vmatpush.msrb.mxu1 %v2624_v45 }
 0x3d2   :  { %v654_v35 = vpop.f32.mrf.mxu2 }
 0x3d3   :  { %v660_v61 = vsub.f32 %v2529_v25, %v654_v35 }
 0x3d5   :  { %v662_v28 = vmul.f32 %v660_v61, %v660_v61 }
 0x3d7   :  { %1815 = vmatmul.msk.f32.vlgmr.msrb.gmra.mxu0 %vm69_vm0, %v662_v28 }
 0x3da   :  { %v657_v22 = vpop.f32.mrf.mxu2 }
 0x3db   :  { %v2544_v18 = vsub.f32 %v2537_v3, %v657_v22 }
 0x3dd   :  { %v663_v0 = vmul.f32 %v2544_v18, %v2544_v18 }
 0x3df   :  { %1816 = vmatmul.msk.f32.gmra.mxu0 %vm69_vm0, %v663_v0  ;;  %v864_v0 = vld [vmem:[%s3404_s2 + $0x1c0] sm:$0xff] }
 0x454   :  { %v687_v23 = vpop.f32.mrf.mxu0 }
 0x455   :  { %v688_v31 = vadd.f32 1e-05, %v687_v23 }
 0x457   :  { %1888 = vrsqrt.f32 %v688_v31  ;;  %vm699_vm1 = vweird.f32 %v688_v31 }
 0x45c   :  { %v690_v49 = vpop.f32.mrf.mxu0 }
 0x45d   :  { %v1889_v46 = vpop.eup %1888  ;;  %v691_v7 = vadd.f32 1e-05, %v690_v49  ;;  %v861_v49 = vld [vmem:[%s3404_s2 + $0x1a8] sm:$0xff] }
 0x45e   :  { %v694_v54 = vmul.f32 %v1889_v46, %v688_v31  ;;  %vm700_vm11 = vweird.f32 %v1889_v46 }
 0x45f   :  { %1890 = vrsqrt.f32 %v691_v7  ;;  %vm701_vm12 = vmor %vm699_vm1, %vm700_vm11  ;;  %vm709_vm4 = vweird.f32 %v691_v7 }
 0x460   :  { %v695_v16 = vmul.f32 %v1889_v46, %v694_v54  ;;  %v860_v54 = vld [vmem:[%s3404_s2 + $0x1a0] sm:$0xff] }
 0x462   :  { %v696_v11 = vmul.f32 0.5, %v695_v16 }
 0x464   :  { %v697_v60 = vsub.f32 1.5, %v696_v11  ;;  %v859_v11 = vld [vmem:[%s3404_s2 + $0x198] sm:$0xff] }
 0x465   :  { %v1891_v1 = vpop.eup %1890 }
 0x466   :  { %v698_v56 = vmul.f32 %v1889_v46, %v697_v60  ;;  %v704_v39 = vmul.f32 %v1891_v1, %v691_v7  ;;  %vm710_vm3 = vweird.f32 %v1891_v1 }
 0x467   :  { %vm711_vm14 = vmor %vm709_vm4, %vm710_vm3 }
 0x468   :  { %v702_v57 = vsel %vm701_vm12, %v1889_v46, %v698_v56  ;;  %v705_v40 = vmul.f32 %v1891_v1, %v704_v39  ;;  %v858_v39 = vld [vmem:[%s3404_s2 + $0x190] sm:$0xff] }
 0x469   :  { %v713_v32 = vmul.f32 %v702_v57, %v660_v61 }
 0x46a   :  { %v706_v4 = vmul.f32 0.5, %v705_v40  ;;  %v857_v40 = vld [vmem:[%s3404_s2 + $0x188] sm:$0xff] }
 0x46b   :  { %v717_v50 = vmul.f32 %v1857_v62, %v713_v32 }
 0x46c   :  { %v707_v43 = vsub.f32 1.5, %v706_v4 }
 0x46d   :  { %v721_v37 = vadd.f32 %v1858_v63, %v717_v50 }
 0x46e   :  { %v708_v8 = vmul.f32 %v1891_v1, %v707_v43  ;;  %v856_v43 = vld [vmem:[%s3404_s2 + $0x180] sm:$0xff] }
 0x46f   :  { %1817 = vmatmul.msk.f32.vlgmr.msra.gmra.mxu1 %vm69_vm0, %v721_v37 }
 0x470   :  { %v712_v48 = vsel %vm711_vm14, %v1891_v1, %v708_v8  ;;  %1467 = vmatpush.msra.mxu1 %v2576_v58 }
 0x471   :  { %v714_v12 = vmul.f32 %v712_v48, %v2544_v18  ;;  %v865_v18 = vld [vmem:[%s3404_s2 + $0x1c8] sm:$0xff] }
 0x472   :  { %1468 = vmatpush.msra.mxu1 %v2582_v14  ;;  %868 = vmatpush.msra.mxu2 %v865_v18 }
 0x473   :  { %v718_v27 = vmul.f32 %v1857_v62, %v714_v12  ;;  %v855_v12 = vld [vmem:[%s3404_s2 + $0x178] sm:$0xff] }
 0x474   :  { %1469 = vmatpush.msra.mxu1 %v2588_v55  ;;  %869 = vmatpush.msra.mxu2 %v864_v0  ;;  %v851_v0 = vld [vmem:[%s3404_s2 + $0x158] sm:$0xff] }
 0x475   :  { %v722_v9 = vadd.f32 %v1858_v63, %v718_v27 }
 0x476   :  { %1470 = vmatpush.msra.mxu1 %v2594_v21  ;;  %870 = vmatpush.msra.mxu2 %v863_v44 }
 0x477   :  { %1818 = vmatmul.msk.f32.gmra.mxu1 %vm69_vm0, %v722_v9 }
 0x478   :  { %1471 = vmatpush.msra.mxu1 %v2603_v33  ;;  %871 = vmatpush.msra.mxu2 %v862_v20 }
 0x47a   :  { %1472 = vmatpush.msra.mxu1 %v2612_v29  ;;  %872 = vmatpush.msra.mxu2 %v861_v49 }
 0x47c   :  { %1473 = vmatpush.msra.mxu1 %v2618_v13  ;;  %873 = vmatpush.msra.mxu2 %v860_v54 }
 0x47e   :  { %1474 = vmatpush.msra.mxu1 %v2624_v45  ;;  %874 = vmatpush.msra.mxu2 %v859_v11 }
 0x480   :  { %875 = vmatpush.msra.mxu2 %v858_v39 }
 0x482   :  { %876 = vmatpush.msra.mxu2 %v857_v40 }
 0x484   :  { %877 = vmatpush.msra.mxu2 %v856_v43 }
 0x486   :  { %878 = vmatpush.msra.mxu2 %v855_v12 }
 0x4ec   :  { %v756_v59 = vpop.f32.mrf.mxu1 }
 0x4ed   :  { %v2641_v51 = vadd.f32 %v1859_v36, %v756_v59 }
 0x4ef   :  { %v2644_v17 = vmul.f32 0.70710677, %v2641_v51  ;;  %v762_v20 = vmul.f32 0.5, %v2641_v51 }
 0x4f1   :  { %v766_v41 = vmul.f32 %v2644_v17, %v2644_v17 }
 0x4f3   :  { %v767_v26 = vmin.f32 %v766_v41, 16.0 }
 0x4f4   :  { %v759_v22 = vpop.f32.mrf.mxu1 }
 0x4f5   :  { %v768_v19 = vmul.f32 2.1237322e-06, %v767_v26  ;;  %v779_v10 = vmul.f32 3.8918573e-05, %v767_v26  ;;  %v2654_v5 = vadd.f32 %v1859_v36, %v759_v22 }
 0x4f7   :  { %v769_v47 = vadd.f32 0.00028619796, %v768_v19  ;;  %v780_v15 = vadd.f32 0.001143296, %v779_v10  ;;  %v2660_v31 = vmul.f32 0.70710677, %v2654_v5 }
 0x4f9   :  { %v770_v6 = vmul.f32 %v769_v47, %v767_v26  ;;  %v781_v24 = vmul.f32 %v780_v15, %v767_v26  ;;  %v806_v52 = vmul.f32 %v2660_v31, %v2660_v31  ;;  %v853_v15 = vld [vmem:[%s3404_s2 + $0x168] sm:$0xff] }
 0x4fb   :  { %v771_v34 = vadd.f32 0.0036580483, %v770_v6  ;;  %v782_v42 = vadd.f32 0.014752088, %v781_v24  ;;  %v2670_v7 = vmin.f32 %v806_v52, 16.0 }
 0x4fd   :  { %v783_v35 = vmul.f32 %v782_v42, %v767_v26  ;;  %v772_v61 = vmul.f32 %v771_v34, %v767_v26  ;;  %v808_v16 = vmul.f32 2.1237322e-06, %v2670_v7  ;;  %v819_v60 = vmul.f32 3.8918573e-05, %v2670_v7 }
 0x4ff   :  { %v784_v28 = vadd.f32 0.112945676, %v783_v35  ;;  %v773_v23 = vadd.f32 0.05243302, %v772_v61  ;;  %v809_v56 = vadd.f32 0.00028619796, %v808_v16 }
 0x500   :  { %v820_v62 = vadd.f32 0.001143296, %v819_v60  ;;  %v852_v35 = vld [vmem:[%s3404_s2 + $0x160] sm:$0xff] }
 0x501   :  { %v785_v30 = vmul.f32 %v784_v28, %v767_v26  ;;  %v774_v53 = vmul.f32 %v773_v23, %v767_v26  ;;  %v810_v57 = vmul.f32 %v809_v56, %v2670_v7 }
 0x502   :  { %v821_v32 = vmul.f32 %v820_v62, %v2670_v7  ;;  %v763_v62 = vmul.f32 0.5, %v2654_v5 }
 0x503   :  { %v786_v38 = vadd.f32 0.4994258, %v785_v30  ;;  %v775_v1 = vadd.f32 0.18741608, %v774_v53  ;;  %v811_v8 = vadd.f32 0.0036580483, %v810_v57 }
 0x504   :  { %v822_v37 = vadd.f32 0.014752088, %v821_v32 }
 0x505   :  { %v787_v2 = vmul.f32 %v786_v38, %v767_v26  ;;  %v776_v4 = vmul.f32 %v775_v1, %v767_v26  ;;  %v854_v26 = vld [vmem:[%s3404_s2 + $0x170] sm:$0xff]  ;;  %v812_v10 = vmul.f32 %v811_v8, %v2670_v7 }
 0x506   :  { %v823_v27 = vmul.f32 %v822_v37, %v2670_v7  ;;  %879 = vmatpush.msra.mxu2 %v854_v26 }
 0x507   :  { %v788_v46 = vadd.f32 1.0, %v787_v2  ;;  %v777_v9 = vadd.f32 1.1283791, %v776_v4  ;;  %v813_v22 = vadd.f32 0.05243302, %v812_v10 }
 0x508   :  { %v824_v19 = vadd.f32 0.112945676, %v823_v27  ;;  %880 = vmatpush.msra.mxu2 %v853_v15 }
 0x509   :  { %1892 = vrcp.f32 %v788_v46  ;;  %v800_v36 = vand.u32 2147483648, %v788_v46  ;;  %v798_v41 = vand.u32 2147483647, %v788_v46  ;;  %vm794_vm6 = vweird.f32 %v788_v46 }
 0x50a   :  { %v825_v6 = vmul.f32 %v824_v19, %v2670_v7  ;;  %v778_v34 = vmul.f32 %v777_v9, %v2644_v17  ;;  %881 = vmatpush.msra.mxu2 %v852_v35  ;;  %v850_v17 = vld [vmem:[%s3404_s2 + $0x150] sm:$0xff]  ;;  %v814_v38 = vmul.f32 %v813_v22, %v2670_v7 }
 0x50b   :  { %v801_v24 = vor.u32 1.1754944e-38, %v800_v36  ;;  %vm799_vm2 = vcmp.eq.f32.partialorder %v798_v41, 8.507059e+37 }
 0x50c   :  { %v826_v61 = vadd.f32 0.4994258, %v825_v6  ;;  %882 = vmatpush.msra.mxu2 %v851_v0  ;;  %v815_v49 = vadd.f32 0.18741608, %v814_v38  ;;  %v987_v38 = vld [vmem:[%s3403_s1 + $0x50] sm:$0xff] }
 0x50e   :  { %v827_v30 = vmul.f32 %v826_v61, %v2670_v7  ;;  %883 = vmatpush.msra.mxu2 %v850_v17  ;;  %v985_v17 = vld [vmem:[%s3403_s1 + $0x40] sm:$0xff] }
 0x50f   :  { %v1893_v63 = vpop.eup %1892 }
 0x510   :  { %v790_v50 = vmul.f32 %v1893_v63, %v788_v46  ;;  %vm795_vm5 = vweird.f32 %v1893_v63  ;;  %v828_v23 = vadd.f32 1.0, %v827_v30  ;;  %1500 = vmatpush.msrb.mxu2 %v2576_v58  ;;  %v816_v46 = vmul.f32 %v815_v49, %v2670_v7  ;;  %v991_v49 = vld [vmem:[%s3403_s1 + $0x70] sm:$0xff] }
 0x511   :  { %vm796_vm15 = vmor %vm794_vm6, %vm795_vm5 }
 0x512   :  { %v791_v48 = vsub.f32 1.0, %v790_v50  ;;  %1894 = vrcp.f32 %v828_v23  ;;  %1501 = vmatpush.msrb.mxu2 %v2582_v14  ;;  %v840_v51 = vand.u32 2147483648, %v828_v23  ;;  %v817_v11 = vadd.f32 1.1283791, %v816_v46 }
 0x513   :  { %v838_v1 = vand.u32 2147483647, %v828_v23  ;;  %vm834_vm9 = vweird.f32 %v828_v23 }
 0x514   :  { %v792_v59 = vmul.f32 %v1893_v63, %v791_v48  ;;  %1502 = vmatpush.msrb.mxu2 %v2588_v55  ;;  %v841_v14 = vor.u32 1.1754944e-38, %v840_v51  ;;  %v818_v7 = vmul.f32 %v817_v11, %v2660_v31 }
 0x515   :  { %vm839_vm13 = vcmp.eq.f32.partialorder %v838_v1, 8.507059e+37 }
 0x516   :  { %v793_v47 = vadd.f32 %v1893_v63, %v792_v59  ;;  %1503 = vmatpush.msrb.mxu2 %v2594_v21 }
 0x518   :  { %v797_v42 = vsel %vm796_vm15, %v1893_v63, %v793_v47  ;;  %v1895_v53 = vpop.eup %1894  ;;  %1504 = vmatpush.msrb.mxu2 %v2603_v33 }
 0x519   :  { %v802_v28 = vsel %vm799_vm2, %v801_v24, %v797_v42  ;;  %v830_v54 = vmul.f32 %v1895_v53, %v828_v23  ;;  %vm835_vm8 = vweird.f32 %v1895_v53  ;;  %v1861_v42 = vld [vmem:[%s3404_s2 + $0x1d8] ss:$0 sm:$0xff]  ;;  %v986_v23 = vld [vmem:[%s3403_s1 + $0x48] sm:$0xff] }
 0x51a   :  { %v803_v18 = vmul.f32 %v802_v28, %v778_v34  ;;  %1505 = vmatpush.msrb.mxu2 %v2612_v29  ;;  %vm836_vm10 = vmor %vm834_vm9, %vm835_vm8  ;;  %v1860_v29 = vld [vmem:[%s3404_s2 + $0x1d0] ss:$0 sm:$0xff] }
 0x51b   :  { %v831_v16 = vsub.f32 1.0, %v830_v54  ;;  %v993_v54 = vld [vmem:[%s3404_s2 + $0x1e8] sm:$0xff] }
 0x51c   :  { %v1819_v44 = vclamps-f32 %v803_v18, 1.0  ;;  %1506 = vmatpush.msrb.mxu2 %v2618_v13  ;;  %v1862_v18 = vld [vmem:[%s3404_s2 + $0x1e0] ss:$0 sm:$0xff] }
 0x51d   :  { %v832_v60 = vmul.f32 %v1895_v53, %v831_v16 }
 0x51e   :  { %v846_v2 = vadd.f32 1.0, %v1819_v44  ;;  %1507 = vmatpush.msrb.mxu2 %v2624_v45 }
 0x51f   :  { %v833_v58 = vadd.f32 %v1895_v53, %v832_v60  ;;  %v994_v60 = vld [vmem:[%s3404_s2 + $0x1f0] sm:$0xff] }
 0x520   :  { %v848_v52 = vmul.f32 %v846_v2, %v762_v20  ;;  %v988_v20 = vld [vmem:[%s3403_s1 + $0x58] sm:$0xff]  ;;  %v989_v2 = vld [vmem:[%s3403_s1 + $0x60] sm:$0xff] }
 0x521   :  { %v837_v56 = vsel %vm836_vm10, %v1895_v53, %v833_v58  ;;  %v992_v53 = vld [vmem:[%s3403_s1 + $0x78] sm:$0xff] }
 0x522   :  { %884 = vmatmul.f32.vlgmr.msra.gmra.mxu2 %v848_v52  ;;  %v842_v55 = vsel %vm839_vm13, %v841_v14, %v837_v56  ;;  %v990_v52 = vld [vmem:[%s3403_s1 + $0x68] sm:$0xff] }
 0x523   :  { %v843_v21 = vmul.f32 %v842_v55, %v818_v7  ;;  %v995_v7 = vld [vmem:[%s3404_s2 + $0x1f8] sm:$0xff] }
 0x525   :  { %v1820_v39 = vclamps-f32 %v843_v21, 1.0 }
 0x527   :  { %v847_v33 = vadd.f32 1.0, %v1820_v39 }
 0x529   :  { %v849_v57 = vmul.f32 %v847_v33, %v763_v62 }
 0x52b   :  { %887 = vmatmul.f32.gmra.mxu2 %v849_v57  ;;  %v996_v57 = vld [vmem:[%s3404_s2 + $0x200] sm:$0xff] }
 0x5a5   :  { %v885_v40 = vpop.f32.mrf.mxu2 }
 0x5a6   :  { %v886_v31 = vadd.f32 %v1860_v29, %v885_v40 }
 0x5a8   :  { %v2731_v32 = vadd.f32 %v886_v31, %v2529_v25 }
 0x5aa   :  { %3432 = vst [vmem:[#allocation5_spill] sm:$0xff] %v2731_v32  ;;  %1821 = vmatmul.msk.f32.vlgmr.msra.gmra.mxu0 %vm69_vm0, %v2731_v32 }
 0x5ae   :  { %v888_v13 = vpop.f32.mrf.mxu2 }
 0x5af   :  { %v889_v45 = vadd.f32 %v1860_v29, %v888_v13 }
 0x5b1   :  { %v2736_v63 = vadd.f32 %v889_v45, %v2537_v3 }
 0x5b3   :  { %3433 = vst [vmem:[#allocation6_spill] sm:$0xff] %v2736_v63  ;;  %1822 = vmatmul.msk.f32.gmra.mxu0 %vm69_vm0, %v2736_v63 }
 0x627   :  { %v916_v5 = vpop.f32.mrf.mxu0 }
 0x628   :  { %v922_v4 = vsub.f32 %v2731_v32, %v916_v5 }
 0x62a   :  { %v924_v50 = vmul.f32 %v922_v4, %v922_v4 }
 0x62c   :  { %1823 = vmatmul.msk.f32.vlgmr.msrb.gmra.mxu1 %vm69_vm0, %v924_v50 }
 0x630   :  { %v919_v43 = vpop.f32.mrf.mxu0 }
 0x631   :  { %v923_v25 = vsub.f32 %v2736_v63, %v919_v43 }
 0x633   :  { %v925_v37 = vmul.f32 %v923_v25, %v923_v25 }
 0x635   :  { %1824 = vmatmul.msk.f32.gmra.mxu1 %vm69_vm0, %v925_v37 }
 0x6a9   :  { %v949_v8 = vpop.f32.mrf.mxu1 }
 0x6aa   :  { %v950_v48 = vadd.f32 1e-05, %v949_v8 }
 0x6ac   :  { %1896 = vrsqrt.f32 %v950_v48  ;;  %vm961_vm1 = vweird.f32 %v950_v48 }
 0x6b2   :  { %v1897_v3 = vpop.eup %1896  ;;  %v952_v9 = vpop.f32.mrf.mxu1 }
 0x6b3   :  { %v956_v12 = vmul.f32 %v1897_v3, %v950_v48  ;;  %v953_v36 = vadd.f32 1e-05, %v952_v9  ;;  %vm962_vm11 = vweird.f32 %v1897_v3 }
 0x6b4   :  { %vm963_vm12 = vmor %vm961_vm1, %vm962_vm11 }
 0x6b5   :  { %v957_v27 = vmul.f32 %v1897_v3, %v956_v12  ;;  %1898 = vrsqrt.f32 %v953_v36  ;;  %vm971_vm4 = vweird.f32 %v953_v36 }
 0x6b7   :  { %v958_v59 = vmul.f32 0.5, %v957_v27  ;;  %v997_v27 = vld [vmem:[%s3404_s2 + $0x208] sm:$0xff] }
 0x6b9   :  { %v959_v41 = vsub.f32 1.5, %v958_v59 }
 0x6bb   :  { %v1899_v26 = vpop.eup %1898  ;;  %v960_v10 = vmul.f32 %v1897_v3, %v959_v41 }
 0x6bc   :  { %v966_v19 = vmul.f32 %v1899_v26, %v953_v36  ;;  %vm972_vm3 = vweird.f32 %v1899_v26 }
 0x6bd   :  { %v964_v24 = vsel %vm963_vm12, %v1897_v3, %v960_v10  ;;  %vm973_vm14 = vmor %vm971_vm4, %vm972_vm3 }
 0x6be   :  { %v967_v47 = vmul.f32 %v1899_v26, %v966_v19  ;;  %v975_v35 = vmul.f32 %v964_v24, %v922_v4 }
 0x6c0   :  { %v968_v15 = vmul.f32 0.5, %v967_v47  ;;  %v979_v0 = vmul.f32 %v1861_v42, %v975_v35 }
 0x6c2   :  { %v969_v6 = vsub.f32 1.5, %v968_v15  ;;  %v983_v44 = vadd.f32 %v1862_v18, %v979_v0 }
 0x6c4   :  { %v970_v34 = vmul.f32 %v1899_v26, %v969_v6 }
 0x6c6   :  { %v974_v61 = vsel %vm973_vm14, %v1899_v26, %v970_v34 }
 0x6c7   :  { %v976_v28 = vmul.f32 %v974_v61, %v923_v25 }
 0x6c9   :  { %v980_v22 = vmul.f32 %v1861_v42, %v976_v28  ;;  %v998_v28 = vld [vmem:[%s3404_s2 + $0x210] sm:$0xff] }
 0x6cb   :  { %v984_v30 = vadd.f32 %v1862_v18, %v980_v22 }
 0x6cd   :  { %1039 = vmatpush.msrb.mxu3 %v984_v30 }
 0x6cf   :  { %1040 = vmatpush.msrb.mxu3 %v983_v44 }
 0x6d0   :  { %1825 = vmatmul.msk.f32.vlgmr.msrb.gmra.mxu3 %vm178_vm7, %v985_v17 }
 0x6d8   :  { %1826 = vmatmul.msk.f32.gmra.mxu3 %vm178_vm7, %v986_v23 }
 0x6e0   :  { %1827 = vmatmul.msk.f32.gmra.mxu3 %vm178_vm7, %v987_v38 }
 0x6e8   :  { %1828 = vmatmul.msk.f32.gmra.mxu3 %vm178_vm7, %v988_v20 }
 0x6f0   :  { %1829 = vmatmul.msk.f32.gmra.mxu3 %vm178_vm7, %v989_v2 }
 0x6f8   :  { %1830 = vmatmul.msk.f32.gmra.mxu3 %vm178_vm7, %v990_v52 }
 0x700   :  { %1831 = vmatmul.msk.f32.gmra.mxu3 %vm178_vm7, %v991_v49 }
 0x708   :  { %1832 = vmatmul.msk.f32.gmra.mxu3 %vm178_vm7, %v992_v53 }
 0x753   :  { %v1042_v46 = vpop.f32.mrf.mxu3 }
 0x754   :  { %v2785_v51 = vadd.f32 %v1042_v46, %v993_v54 }
 0x756   :  { %3434 = vst [vmem:[#allocation7_spill] sm:$0xff] %v2785_v51  ;;  %v2788_v11 = vmul.f32 0.70710677, %v2785_v51 }
 0x758   :  { %v1082_v1 = vmul.f32 %v2788_v11, %v2788_v11 }
 0x75a   :  { %v2800_v56 = vmin.f32 %v1082_v1, 16.0 }
 0x75b   :  { %v1045_v16 = vpop.f32.mrf.mxu3 }
 0x75c   :  { %v2795_v14 = vadd.f32 %v1045_v16, %v994_v60  ;;  %v1095_v39 = vmul.f32 3.8918573e-05, %v2800_v56  ;;  %v1084_v36 = vmul.f32 2.1237322e-06, %v2800_v56 }
 0x75e   :  { %3435 = vst [vmem:[#allocation8_spill] sm:$0xff] %v2795_v14  ;;  %v2803_v55 = vmul.f32 0.70710677, %v2795_v14  ;;  %v1096_v40 = vadd.f32 0.001143296, %v1095_v39 }
 0x75f   :  { %v1085_v15 = vadd.f32 0.00028619796, %v1084_v36 }
 0x760   :  { %v1122_v62 = vmul.f32 %v2803_v55, %v2803_v55  ;;  %v1097_v5 = vmul.f32 %v1096_v40, %v2800_v56 }
 0x761   :  { %v1086_v18 = vmul.f32 %v1085_v15, %v2800_v56 }
 0x762   :  { %v2818_v13 = vmin.f32 %v1122_v62, 16.0  ;;  %v1098_v25 = vadd.f32 0.014752088, %v1097_v5 }
 0x763   :  { %v1048_v58 = vpop.f32.mrf.mxu3  ;;  %v1087_v49 = vadd.f32 0.0036580483, %v1086_v18 }
 0x764   :  { %v2805_v21 = vadd.f32 %v1048_v58, %v995_v7  ;;  %v1135_v50 = vmul.f32 3.8918573e-05, %v2818_v13  ;;  %v1099_v3 = vmul.f32 %v1098_v25, %v2800_v56  ;;  %v1124_v23 = vmul.f32 2.1237322e-06, %v2818_v13  ;;  %v999_v58 = vld [vmem:[%s3404_s2 + $0x218] sm:$0xff] }
 0x765   :  { %v1088_v62 = vmul.f32 %v1087_v49, %v2800_v56 }
 0x766   :  { %3436 = vst [vmem:[#allocation9_spill] sm:$0xff] %v2805_v21  ;;  %v2811_v33 = vmul.f32 0.70710677, %v2805_v21  ;;  %v1136_v8 = vadd.f32 0.001143296, %v1135_v50 }
 0x767   :  { %v1100_v19 = vadd.f32 0.112945676, %v1099_v3  ;;  %v1125_v54 = vadd.f32 0.00028619796, %v1124_v23  ;;  %v1089_v3 = vadd.f32 0.05243302, %v1088_v62 }
 0x768   :  { %v1162_v45 = vmul.f32 %v2811_v33, %v2811_v33  ;;  %v1137_v41 = vmul.f32 %v1136_v8, %v2818_v13 }
 0x769   :  { %v1101_v42 = vmul.f32 %v1100_v19, %v2800_v56  ;;  %v1126_v40 = vmul.f32 %v1125_v54, %v2818_v13 }
 0x76a   :  { %v2827_v43 = vmin.f32 %v1162_v45, 16.0  ;;  %v1138_v6 = vadd.f32 0.014752088, %v1137_v41 }
 0x76b   :  { %v1051_v29 = vpop.f32.mrf.mxu3  ;;  %v1102_v38 = vadd.f32 0.4994258, %v1101_v42  ;;  %v1127_v41 = vadd.f32 0.0036580483, %v1126_v40 }
 0x76c   :  { %v2816_v31 = vadd.f32 %v1051_v29, %v996_v57  ;;  %v1175_v48 = vmul.f32 3.8918573e-05, %v2827_v43  ;;  %v1139_v0 = vmul.f32 %v1138_v6, %v2818_v13  ;;  %v1164_v25 = vmul.f32 2.1237322e-06, %v2827_v43  ;;  %v1000_v6 = vld [vmem:[%s3404_s2 + $0x220] sm:$0xff] }
 0x76d   :  { %v1103_v60 = vmul.f32 %v1102_v38, %v2800_v56 }
 0x76e   :  { %v2824_v4 = vmul.f32 0.70710677, %v2816_v31  ;;  %v1176_v26 = vadd.f32 0.001143296, %v1175_v48  ;;  %v1140_v53 = vadd.f32 0.112945676, %v1139_v0  ;;  %v1128_v0 = vmul.f32 %v1127_v41, %v2818_v13 }
 0x76f   :  { %v2880_v50 = vadd.f32 1.0, %v1103_v60  ;;  %v1165_v19 = vadd.f32 0.00028619796, %v1164_v25 }
 0x770   :  { %v1202_v37 = vmul.f32 %v2824_v4, %v2824_v4  ;;  %v1177_v24 = vmul.f32 %v1176_v26, %v2827_v43  ;;  %v1141_v57 = vmul.f32 %v1140_v53, %v2818_v13 }
 0x771   :  { %1900 = vrcp.f32 %v2880_v50  ;;  %v1166_v38 = vmul.f32 %v1165_v19, %v2827_v43  ;;  %vm1110_vm6 = vweird.f32 %v2880_v50 }
 0x772   :  { %v2833_v12 = vmin.f32 %v1202_v37, 16.0  ;;  %v1178_v30 = vadd.f32 0.014752088, %v1177_v24 }
 0x773   :  { %v1054_v9 = vpop.f32.mrf.mxu3 }
 0x774   :  { %v2839_v59 = vadd.f32 %v1054_v9, %v997_v27  ;;  %v1215_v10 = vmul.f32 3.8918573e-05, %v2833_v12  ;;  %v1179_v46 = vmul.f32 %v1178_v30, %v2827_v43  ;;  %v1142_v27 = vadd.f32 0.4994258, %v1141_v57 }
 0x775   :  { %v1204_v30 = vmul.f32 2.1237322e-06, %v2833_v12  ;;  %v1167_v57 = vadd.f32 0.0036580483, %v1166_v38 }
 0x776   :  { %v2844_v47 = vmul.f32 0.70710677, %v2839_v59  ;;  %v1216_v35 = vadd.f32 0.001143296, %v1215_v10  ;;  %v1180_v29 = vadd.f32 0.112945676, %v1179_v46 }
 0x777   :  { %v2910_v54 = vpop.eup %1900 }
 0x778   :  { %v1242_v34 = vmul.f32 %v2844_v47, %v2844_v47  ;;  %v1217_v20 = vmul.f32 %v1216_v35, %v2833_v12  ;;  %v1181_v9 = vmul.f32 %v1180_v29, %v2827_v43  ;;  %v1090_v35 = vmul.f32 %v1089_v3, %v2800_v56 }
 0x779   :  { %v1106_v25 = vmul.f32 %v2910_v54, %v2880_v50  ;;  %vm1111_vm5 = vweird.f32 %v2910_v54 }
 0x77a   :  { %v2850_v61 = vmin.f32 %v1242_v34, 16.0  ;;  %v1218_v1 = vadd.f32 0.014752088, %v1217_v20  ;;  %vm2995_vm15 = vmor %vm1110_vm6, %vm1111_vm5 }
 0x77b   :  { %v1057_v22 = vpop.f32.mrf.mxu3 }
 0x77c   :  { %v1255_v44 = vmul.f32 3.8918573e-05, %v2850_v61  ;;  %v2858_v17 = vadd.f32 %v1057_v22, %v998_v28  ;;  %v1219_v37 = vmul.f32 %v1218_v1, %v2833_v12  ;;  %v1143_v28 = vmul.f32 %v1142_v27, %v2818_v13 }
 0x77d   :  { %v1182_v22 = vadd.f32 0.4994258, %v1181_v9  ;;  %v1244_v49 = vmul.f32 2.1237322e-06, %v2850_v61 }
 0x77e   :  { %v1256_v2 = vadd.f32 0.001143296, %v1255_v44  ;;  %v2863_v52 = vmul.f32 0.70710677, %v2858_v17  ;;  %v1220_v10 = vadd.f32 0.112945676, %v1219_v37 }
 0x77f   :  { %v2912_v60 = vadd.f32 1.0, %v1143_v28  ;;  %v1183_v1 = vmul.f32 %v1182_v22, %v2827_v43  ;;  %v1245_v37 = vadd.f32 0.00028619796, %v1244_v49 }
 0x780   :  { %v1282_v16 = vmul.f32 %v2863_v52, %v2863_v52  ;;  %v1257_v39 = vmul.f32 %v1256_v2, %v2850_v61  ;;  %v1221_v20 = vmul.f32 %v1220_v10, %v2833_v12 }
 0x781   :  { %1902 = vrcp.f32 %v2912_v60  ;;  %v2923_v3 = vadd.f32 1.0, %v1183_v1  ;;  %vm1150_vm2 = vweird.f32 %v2912_v60 }
 0x782   :  { %v2876_v45 = vmin.f32 %v1282_v16, 16.0  ;;  %v1258_v8 = vadd.f32 0.014752088, %v1257_v39  ;;  %v1091_v16 = vadd.f32 0.18741608, %v1090_v35 }
 0x783   :  { %v1060_v7 = vpop.f32.mrf.mxu3  ;;  %v1205_v39 = vadd.f32 0.00028619796, %v1204_v30  ;;  %v1222_v29 = vadd.f32 0.4994258, %v1221_v20  ;;  %1904 = vrcp.f32 %v2923_v3  ;;  %vm1190_vm13 = vweird.f32 %v2923_v3 }
 0x784   :  { %v2878_v5 = vadd.f32 %v1060_v7, %v999_v58  ;;  %v1295_v48 = vmul.f32 3.8918573e-05, %v2876_v45  ;;  %v1259_v34 = vmul.f32 %v1258_v8, %v2850_v61  ;;  %v1129_v7 = vadd.f32 0.05243302, %v1128_v0 }
 0x785   :  { %v1092_v41 = vmul.f32 %v1091_v16, %v2800_v56  ;;  %v1107_v56 = vsub.f32 1.0, %v1106_v25  ;;  %v3455_v21 = vand.u32 2147483647, %v2923_v3 }
 0x786   :  { %v2887_v36 = vmul.f32 0.70710677, %v2878_v5  ;;  %v1296_v26 = vadd.f32 0.001143296, %v1295_v48  ;;  %v1260_v53 = vadd.f32 0.112945676, %v1259_v34  ;;  %v1130_v0 = vmul.f32 %v1129_v7, %v2818_v13 }
 0x787   :  { %v1108_v25 = vmul.f32 %v2910_v54, %v1107_v56 }
 0x788   :  { %v1322_v15 = vmul.f32 %v2887_v36, %v2887_v36  ;;  %v1297_v42 = vmul.f32 %v1296_v26, %v2876_v45  ;;  %v1261_v8 = vmul.f32 %v1260_v53, %v2850_v61  ;;  %v1206_v26 = vmul.f32 %v1205_v39, %v2833_v12 }
 0x78a   :  { %v2899_v18 = vmin.f32 %v1322_v15, 16.0  ;;  %v1298_v44 = vadd.f32 0.014752088, %v1297_v42  ;;  %v1168_v15 = vmul.f32 %v1167_v57, %v2827_v43  ;;  %v1246_v42 = vmul.f32 %v1245_v37, %v2850_v61 }
 0x78b   :  { %v1063_v24 = vpop.f32.mrf.mxu3  ;;  %v1262_v35 = vadd.f32 0.4994258, %v1261_v8  ;;  %v2949_v57 = vadd.f32 1.1283791, %v1092_v41 }
 0x78c   :  { %v2903_v23 = vadd.f32 %v1063_v24, %v1000_v6  ;;  %v1335_v2 = vmul.f32 3.8918573e-05, %v2899_v18  ;;  %v1299_v46 = vmul.f32 %v1298_v44, %v2876_v45  ;;  %v1324_v9 = vmul.f32 2.1237322e-06, %v2899_v18 }
 0x78d   :  { %v1223_v6 = vmul.f32 %v1222_v29, %v2833_v12  ;;  %v1284_v24 = vmul.f32 2.1237322e-06, %v2876_v45  ;;  %v1207_v44 = vadd.f32 0.0036580483, %v1206_v26  ;;  %v1169_v49 = vadd.f32 0.05243302, %v1168_v15 }
 0x78e   :  { %v1336_v58 = vadd.f32 0.001143296, %v1335_v2  ;;  %v2916_v62 = vmul.f32 0.70710677, %v2903_v23  ;;  %v1300_v40 = vadd.f32 0.112945676, %v1299_v46  ;;  %v2941_v2 = vpop.eup %1902  ;;  %v1263_v7 = vmul.f32 %v1262_v35, %v2850_v61 }
 0x78f   :  { %v1325_v30 = vadd.f32 0.00028619796, %v1324_v9  ;;  %v1285_v53 = vadd.f32 0.00028619796, %v1284_v24  ;;  %v2945_v1 = vadd.f32 1.0, %v1223_v6  ;;  %v1146_v37 = vmul.f32 %v2941_v2, %v2912_v60 }
 0x790   :  { %v1337_v48 = vmul.f32 %v1336_v58, %v2899_v18  ;;  %v1301_v27 = vmul.f32 %v1300_v40, %v2876_v45  ;;  %v1362_v10 = vmul.f32 %v2916_v62, %v2916_v62  ;;  %v1247_v58 = vadd.f32 0.0036580483, %v1246_v42 }
 0x791   :  { %v1131_v29 = vadd.f32 0.18741608, %v1130_v0  ;;  %v1326_v40 = vmul.f32 %v1325_v30, %v2899_v18  ;;  %v1208_v8 = vmul.f32 %v1207_v44, %v2833_v12  ;;  %v1286_v9 = vmul.f32 %v1285_v53, %v2876_v45 }
 0x792   :  { %v1338_v19 = vadd.f32 0.014752088, %v1337_v48  ;;  %v1302_v34 = vadd.f32 0.4994258, %v1301_v27  ;;  %v2936_v22 = vmin.f32 %v1362_v10, 16.0  ;;  %v2958_v27 = vpop.eup %1904  ;;  %v1170_v10 = vmul.f32 %v1169_v49, %v2827_v43 }
 0x793   :  { %1906 = vrcp.f32 %v2945_v1  ;;  %v1248_v15 = vmul.f32 %v1247_v58, %v2850_v61  ;;  %v2966_v6 = vadd.f32 1.0, %v1263_v7  ;;  %v1132_v24 = vmul.f32 %v1131_v29, %v2818_v13 }
 0x794   :  { %v1339_v28 = vmul.f32 %v1338_v19, %v2899_v18  ;;  %v1364_v20 = vmul.f32 2.1237322e-06, %v2936_v22  ;;  %v1303_v46 = vmul.f32 %v1302_v34, %v2876_v45  ;;  %v1375_v16 = vmul.f32 3.8918573e-05, %v2936_v22 }
 0x795   :  { %v1327_v34 = vadd.f32 0.0036580483, %v1326_v40  ;;  %v1186_v56 = vmul.f32 %v2958_v27, %v2923_v3  ;;  %v1209_v0 = vadd.f32 0.05243302, %v1208_v8  ;;  %v1287_v44 = vadd.f32 0.0036580483, %v1286_v9 }
 0x796   :  { %v1340_v38 = vadd.f32 0.112945676, %v1339_v28  ;;  %v1365_v48 = vadd.f32 0.00028619796, %v1364_v20  ;;  %v2961_v41 = vadd.f32 1.0, %v1303_v46  ;;  %v1147_v28 = vsub.f32 1.0, %v1146_v37 }
 0x797   :  { %v1376_v19 = vadd.f32 0.001143296, %v1375_v16  ;;  %v2978_v13 = vadd.f32 %v2910_v54, %v1108_v25  ;;  %v1171_v49 = vadd.f32 0.18741608, %v1170_v10  ;;  %v1249_v53 = vadd.f32 0.05243302, %v1248_v15 }
 0x798   :  { %v1341_v39 = vmul.f32 %v1340_v38, %v2899_v18  ;;  %v1366_v30 = vmul.f32 %v1365_v48, %v2936_v22  ;;  %1908 = vrcp.f32 %v2961_v41  ;;  %v1328_v58 = vmul.f32 %v1327_v34, %v2899_v18 }
 0x799   :  { %v1377_v35 = vmul.f32 %v1376_v19, %v2936_v22  ;;  %1910 = vrcp.f32 %v2966_v6  ;;  %v2985_v7 = vpop.eup %1906  ;;  %v1156_v29 = vand.u32 2147483648, %v2912_v60  ;;  %v1148_v8 = vmul.f32 %v2941_v2, %v1147_v28 }
 0x79a   :  { %v1342_v26 = vadd.f32 0.4994258, %v1341_v39  ;;  %v2987_v39 = vadd.f32 1.1283791, %v1132_v24  ;;  %v1367_v40 = vadd.f32 0.0036580483, %v1366_v30  ;;  %v1210_v9 = vmul.f32 %v1209_v0, %v2833_v12 }
 0x79b   :  { %v1378_v20 = vadd.f32 0.014752088, %v1377_v35  ;;  %v1187_v48 = vsub.f32 1.0, %v1186_v56  ;;  %v1172_v10 = vmul.f32 %v1171_v49, %v2827_v43  ;;  %v1250_v15 = vmul.f32 %v1249_v53, %v2850_v61 }
 0x79c   :  { %v1343_v42 = vmul.f32 %v1342_v26, %v2899_v18  ;;  %v1288_v26 = vmul.f32 %v1287_v44, %v2876_v45  ;;  %v1226_v35 = vmul.f32 %v2985_v7, %v2945_v1  ;;  %v1329_v28 = vadd.f32 0.05243302, %v1328_v58 }
 0x79d   :  { %v1379_v25 = vmul.f32 %v1378_v20, %v2936_v22  ;;  %vm1151_vm8 = vweird.f32 %v2941_v2  ;;  %v3017_v0 = vor.u32 1.1754944e-38, %v1156_v29  ;;  %v1368_v43 = vmul.f32 %v1367_v40, %v2936_v22 }
 0x79e   :  { %v2975_v38 = vadd.f32 1.0, %v1343_v42  ;;  %v3008_v34 = vpop.eup %1908  ;;  %v3024_v20 = vadd.f32 %v2941_v2, %v1148_v8  ;;  %v1188_v49 = vmul.f32 %v2958_v27, %v1187_v48  ;;  %v1211_v53 = vadd.f32 0.18741608, %v1210_v9  ;;  %vm3042_vm10 = vmor %vm1150_vm2, %vm1151_vm8 }
 0x79f   :  { %v1380_v24 = vadd.f32 0.112945676, %v1379_v25  ;;  %v3014_v56 = vpop.eup %1910  ;;  %v1289_v25 = vadd.f32 0.05243302, %v1288_v26  ;;  %v3027_v58 = vadd.f32 1.1283791, %v1172_v10  ;;  %v1306_v29 = vmul.f32 %v3008_v34, %v2961_v41 }
 0x7a0   :  { %1912 = vrcp.f32 %v2975_v38  ;;  %v1251_v19 = vadd.f32 0.18741608, %v1250_v15  ;;  %v1227_v42 = vsub.f32 1.0, %v1226_v35  ;;  %v1330_v8 = vmul.f32 %v1329_v28, %v2899_v18 }
 0x7a1   :  { %v1381_v30 = vmul.f32 %v1380_v24, %v2936_v22  ;;  %v1266_v24 = vmul.f32 %v3014_v56, %v2966_v6  ;;  %vm1191_vm9 = vweird.f32 %v2958_v27  ;;  %v1196_v48 = vand.u32 2147483648, %v2923_v3 }
 0x7a2   :  { %v1369_v26 = vadd.f32 0.05243302, %v1368_v43  ;;  %v3047_v15 = vadd.f32 %v2958_v27, %v1188_v49  ;;  %v1212_v35 = vmul.f32 %v1211_v53, %v2833_v12  ;;  %v1290_v28 = vmul.f32 %v1289_v25, %v2876_v45  ;;  %vm3063_vm11 = vmor %vm1190_vm13, %vm1191_vm9 }
 0x7a3   :  { %v1382_v16 = vadd.f32 0.4994258, %v1381_v30  ;;  %v1307_v46 = vsub.f32 1.0, %v1306_v29  ;;  %v1228_v63 = vmul.f32 %v2985_v7, %v1227_v42  ;;  %v1267_v49 = vsub.f32 1.0, %v1266_v24 }
 0x7a4   :  { %v1331_v32 = vadd.f32 0.18741608, %v1330_v8  ;;  %v3068_v53 = vor.u32 1.1754944e-38, %v1196_v48  ;;  %v3076_v42 = vadd.f32 1.1283791, %v1212_v35  ;;  %vm1231_vm1 = vweird.f32 %v2985_v7 }
 0x7a5   :  { %v1383_v30 = vmul.f32 %v1382_v16, %v2936_v22  ;;  %v1291_v29 = vadd.f32 0.18741608, %v1290_v28  ;;  %v1234_v24 = vand.u32 2147483647, %v2945_v1  ;;  %v1236_v8 = vand.u32 2147483648, %v2945_v1 }
 0x7a6   :  { %v3021_v44 = vpop.eup %1912  ;;  %v1308_v48 = vmul.f32 %v3008_v34, %v1307_v46  ;;  %vm1230_vm12 = vweird.f32 %v2945_v1  ;;  %v1268_v35 = vmul.f32 %v3014_v56, %v1267_v49  ;;  %v1332_v28 = vmul.f32 %v1331_v32, %v2899_v18 }
 0x7a7   :  { %v1346_v40 = vmul.f32 %v3021_v44, %v2975_v38  ;;  %v3059_v51 = vadd.f32 1.0, %v1383_v30  ;;  %vm1270_vm3 = vweird.f32 %v2966_v6  ;;  %vm1351_vm4 = vweird.f32 %v3021_v44 }
 0x7a8   :  { %v1314_v46 = vand.u32 2147483647, %v2961_v41  ;;  %v1356_v16 = vand.u32 2147483648, %v2975_v38  ;;  %vm1311_vm14 = vweird.f32 %v3008_v34  ;;  %vm1350_vm5 = vweird.f32 %v2975_v38 }
 0x7a9   :  { %v1347_v9 = vsub.f32 1.0, %v1346_v40  ;;  %v1252_v40 = vmul.f32 %v1251_v19, %v2850_v61  ;;  %v1370_v61 = vmul.f32 %v1369_v26, %v2936_v22  ;;  %1914 = vrcp.f32 %v3059_v51  ;;  %vm3105_vm2 = vmor %vm1350_vm5, %vm1351_vm4 }
 0x7aa   :  { %v1292_v19 = vmul.f32 %v1291_v29, %v2876_v45  ;;  %v1354_v32 = vand.u32 2147483647, %v2975_v38  ;;  %v1269_v49 = vadd.f32 %v3014_v56, %v1268_v35  ;;  %vm1271_vm6 = vweird.f32 %v3014_v56 }
 0x7ab   :  { %v1348_v25 = vmul.f32 %v3021_v44, %v1347_v9  ;;  %v3084_v9 = vadd.f32 %v2985_v7, %v1228_v63  ;;  %v1253_v26 = vadd.f32 1.1283791, %v1252_v40  ;;  %v1371_v43 = vadd.f32 0.18741608, %v1370_v61  ;;  %vm3132_vm5 = vmor %vm1270_vm3, %vm1271_vm6 }
 0x7ac   :  { %v1316_v63 = vand.u32 2147483648, %v2961_v41  ;;  %v1309_v40 = vadd.f32 %v3008_v34, %v1308_v48  ;;  %v1274_v45 = vand.u32 2147483647, %v2966_v6  ;;  %vm3109_vm8 = vcmp.eq.f32.partialorder %v1234_v24, 8.507059e+37  ;;  %vm3148_vm3 = vmor %vm1230_vm12, %vm1231_vm1 }
 0x7ad   :  { %v1349_v30 = vadd.f32 %v3021_v44, %v1348_v25  ;;  %v1333_v25 = vadd.f32 1.1283791, %v1332_v28  ;;  %vm1310_vm9 = vweird.f32 %v2961_v41  ;;  %v1372_v48 = vmul.f32 %v1371_v43, %v2936_v22 }
 0x7ae   :  { %v1276_v28 = vand.u32 2147483648, %v2966_v6  ;;  %v1293_v14 = vadd.f32 1.1283791, %v1292_v19  ;;  %vm3122_vm13 = vmor %vm1310_vm9, %vm1311_vm14  ;;  %vm3126_vm4 = vcmp.eq.f32.partialorder %v1314_v46, 8.507059e+37  ;;  %v1357_v41 = vor.u32 1.1754944e-38, %v1356_v16 }
 0x7af   :  { %v1915_v18 = vpop.eup %1914  ;;  %v1353_v38 = vsel %vm3105_vm2, %v3021_v44, %v1349_v30  ;;  %v1313_v44 = vsel %vm3122_vm13, %v3008_v34, %v1309_v40  ;;  %v1317_v43 = vor.u32 1.1754944e-38, %v1316_v63  ;;  %vm1355_vm14 = vcmp.eq.f32.partialorder %v1354_v32, 8.507059e+37 }
 0x7b0   :  { %v1386_v35 = vmul.f32 %v1915_v18, %v3059_v51  ;;  %v1273_v30 = vsel %vm3132_vm5, %v3014_v56, %v1269_v49  ;;  %v1334_v46 = vmul.f32 %v1333_v25, %v2887_v36  ;;  %v1358_v16 = vsel %vm1355_vm14, %v1357_v41, %v1353_v38 }
 0x7b1   :  { %v1396_v6 = vand.u32 2147483648, %v3059_v51  ;;  %v1373_v34 = vadd.f32 1.1283791, %v1372_v48  ;;  %vm1391_vm6 = vweird.f32 %v1915_v18  ;;  %v1394_v40 = vand.u32 2147483647, %v3059_v51 }
 0x7b2   :  { %v1387_v19 = vsub.f32 1.0, %v1386_v35  ;;  %v1233_v36 = vsel %vm3148_vm3, %v2985_v7, %v3084_v9  ;;  %vm1275_vm2 = vcmp.eq.f32.partialorder %v1274_v45, 8.507059e+37  ;;  %v1277_v56 = vor.u32 1.1754944e-38, %v1276_v28 }
 0x7b3   :  { %v1318_v32 = vsel %vm3126_vm4, %v1317_v43, %v1313_v44  ;;  %v1294_v1 = vmul.f32 %v1293_v14, %v2863_v52  ;;  %v1359_v49 = vmul.f32 %v1358_v16, %v1334_v46  ;;  %vm1390_vm1 = vweird.f32 %v3059_v51 }
 0x7b4   :  { %v1388_v63 = vmul.f32 %v1915_v18, %v1387_v19  ;;  %v1237_v38 = vor.u32 1.1754944e-38, %v1236_v8  ;;  %v1254_v48 = vmul.f32 %v1253_v26, %v2844_v47  ;;  %v1278_v35 = vsel %vm1275_vm2, %v1277_v56, %v1273_v30  ;;  %vm1392_vm12 = vmor %vm1390_vm1, %vm1391_vm6  ;;  %v3463_v56 = vld [vmem:[#allocation8_spill] sm:$0xff] }
 0x7b5   :  { %v1397_v24 = vor.u32 1.1754944e-38, %v1396_v6  ;;  %v1319_v41 = vmul.f32 %v1318_v32, %v1294_v1  ;;  %v1374_v7 = vmul.f32 %v1373_v34, %v2916_v62  ;;  %vm1395_vm9 = vcmp.eq.f32.partialorder %v1394_v40, 8.507059e+37 }
 0x7b6   :  { %v1389_v25 = vadd.f32 %v1915_v18, %v1388_v63  ;;  %vm1195_vm13 = vcmp.eq.f32.partialorder %v3455_v21, 8.507059e+37  ;;  %v1214_v14 = vmul.f32 %v3076_v42, %v2824_v4  ;;  %v1238_v51 = vsel %vm3109_vm8, %v1237_v38, %v1233_v36  ;;  %v3462_v63 = vld [vmem:[#allocation9_spill] sm:$0xff] }
 0x7b7   :  { %v3456_v47 = vsel %vm3063_vm11, %v2958_v27, %v3047_v15  ;;  %v1279_v62 = vmul.f32 %v1278_v35, %v1254_v48  ;;  %v3457_v3 = vand.u32 2147483647, %v2880_v50  ;;  %v3458_v45 = vand.u32 2147483648, %v2880_v50  ;;  %v1418_v48 = vld [vmem:[%s3404_s2 + $0x228] sm:$0xff]  ;;  %v1419_v35 = vld [vmem:[%s3404_s2 + $0x230] sm:$0xff] }
 0x7b8   :  { %v1393_v9 = vsel %vm1392_vm12, %v1915_v18, %v1389_v25  ;;  %v1198_v8 = vsel %vm1195_vm13, %v3068_v53, %v3456_v47  ;;  %v1839_v18 = vclamps-f32 %v1359_v49, 1.0  ;;  %v3459_v42 = vand.u32 2147483647, %v2912_v60  ;;  %v3464_v49 = vld [vmem:[#allocation7_spill] sm:$0xff]  ;;  %v3466_v47 = vld [vmem:[#allocation6_spill] sm:$0xff] }
 0x7b9   :  { %v1398_v52 = vsel %vm1395_vm9, %v1397_v24, %v1393_v9  ;;  %vm1115_vm4 = vcmp.eq.f32.partialorder %v3457_v3, 8.507059e+37  ;;  %v1117_v4 = vor.u32 1.1754944e-38, %v3458_v45  ;;  %v1174_v12 = vmul.f32 %v3027_v58, %v2811_v33  ;;  %v1420_v24 = vld [vmem:[%s3404_s2 + $0x238] sm:$0xff]  ;;  %v3465_v9 = vld [vmem:[#allocation5_spill] sm:$0xff] }
 0x7ba   :  { %v1399_v26 = vmul.f32 %v1398_v52, %v1374_v7  ;;  %vm1155_vm8 = vcmp.eq.f32.partialorder %v3459_v42, 8.507059e+37  ;;  %v3460_v27 = vsel %vm3042_vm10, %v2941_v2, %v3024_v20  ;;  %v1239_v53 = vmul.f32 %v1238_v51, %v1214_v14  ;;  %v1421_v14 = vld [vmem:[%s3404_s2 + $0x240] sm:$0xff] }
 0x7bb   :  { %v1158_v15 = vsel %vm1155_vm8, %v3017_v0, %v3460_v27  ;;  %v1838_v28 = vclamps-f32 %v1319_v41, 1.0  ;;  %v3461_v50 = vsel %vm2995_vm15, %v2910_v54, %v2978_v13  ;;  %v1134_v22 = vmul.f32 %v2987_v39, %v2803_v55  ;;  %v1552_v42 = vld [vmem:[%s3405_s3 + $0x80] sm:$0xff]  ;;  %v1550_v27 = vld [vmem:[%s3405_s3 + $0x70] sm:$0xff] }
 0x7bc   :  { %v1840_v29 = vclamps-f32 %v1399_v26, 1.0  ;;  %v1118_v60 = vsel %vm1115_vm4, %v1117_v4, %v3461_v50  ;;  %v1199_v33 = vmul.f32 %v1198_v8, %v1174_v12  ;;  %v1073_v58 = vmul.f32 0.5, %v2903_v23  ;;  %v1551_v12 = vld [vmem:[%s3405_s3 + $0x78] sm:$0xff] }
 0x7bd   :  { %v1408_v44 = vadd.f32 1.0, %v1839_v18  ;;  %v1837_v2 = vclamps-f32 %v1279_v62, 1.0  ;;  %v1094_v0 = vmul.f32 %v2949_v57, %v2788_v11  ;;  %v1159_v20 = vmul.f32 %v1158_v15, %v1134_v22  ;;  %v1547_v50 = vld [vmem:[%s3405_s3 + $0x58] sm:$0xff] }
 0x7be   :  { %v1409_v10 = vadd.f32 1.0, %v1840_v29  ;;  %v1072_v43 = vmul.f32 0.5, %v2878_v5  ;;  %v1407_v19 = vadd.f32 1.0, %v1838_v28  ;;  %v1836_v30 = vclamps-f32 %v1239_v53, 1.0  ;;  %v1549_v53 = vld [vmem:[%s3405_s3 + $0x68] sm:$0xff]  ;;  %v1548_v28 = vld [vmem:[%s3405_s3 + $0x60] sm:$0xff] }
 0x7bf   :  { %v1119_v54 = vmul.f32 %v1118_v60, %v1094_v0  ;;  %v1071_v13 = vmul.f32 0.5, %v2858_v17  ;;  %v1406_v39 = vadd.f32 1.0, %v1837_v2  ;;  %v1835_v46 = vclamps-f32 %v1199_v33, 1.0  ;;  %v1546_v60 = vld [vmem:[%s3405_s3 + $0x50] sm:$0xff]  ;;  %v1545_v33 = vld [vmem:[%s3405_s3 + $0x48] sm:$0xff] }
 0x7c0   :  { %v1417_v37 = vmul.f32 %v1409_v10, %v1073_v58  ;;  %v1416_v55 = vmul.f32 %v1408_v44, %v1072_v43  ;;  %v1070_v23 = vmul.f32 0.5, %v2839_v59  ;;  %v1405_v6 = vadd.f32 1.0, %v1836_v30  ;;  %v1863_v30 = vld [vmem:[%s3404_s2 + $0x248] ss:$0 sm:$0xff] }
 0x7c1   :  { %v1415_v16 = vmul.f32 %v1407_v19, %v1071_v13  ;;  %v1834_v61 = vclamps-f32 %v1159_v20, 1.0  ;;  %v1069_v11 = vmul.f32 0.5, %v2816_v31  ;;  %v1404_v57 = vadd.f32 1.0, %v1835_v46 }
 0x7c2   :  { %1436 = vmatpush.msrb.mxu0 %v1417_v37  ;;  %v1414_v5 = vmul.f32 %v1406_v39, %v1070_v23  ;;  %v1833_v34 = vclamps-f32 %v1119_v54, 1.0  ;;  %v1068_v40 = vmul.f32 0.5, %v3462_v63  ;;  %v1067_v32 = vmul.f32 0.5, %v3463_v56  ;;  %v1864_v39 = vld [vmem:[%s3404_s2 + $0x250] ss:$0 sm:$0xff] }
 0x7c3   :  { %v1413_v17 = vmul.f32 %v1405_v6, %v1069_v11  ;;  %v1403_v36 = vadd.f32 1.0, %v1834_v61  ;;  %v1066_v25 = vmul.f32 0.5, %v3464_v49  ;;  %v1865_v63 = vld [vmem:[%s3405_s3 + $0x88] ss:$0 sm:$0xff] }
 0x7c4   :  { %1437 = vmatpush.msrb.mxu0 %v1416_v55  ;;  %v1412_v1 = vmul.f32 %v1404_v57, %v1068_v40  ;;  %v1402_v59 = vadd.f32 1.0, %v1833_v34 }
 0x7c5   :  { %v1411_v38 = vmul.f32 %v1403_v36, %v1067_v32 }
 0x7c6   :  { %1438 = vmatpush.msrb.mxu0 %v1415_v16  ;;  %v1410_v31 = vmul.f32 %v1402_v59, %v1066_v25 }
 0x7c8   :  { %1439 = vmatpush.msrb.mxu0 %v1414_v5 }
 0x7ca   :  { %1440 = vmatpush.msrb.mxu0 %v1413_v17 }
 0x7cc   :  { %1441 = vmatpush.msrb.mxu0 %v1412_v1 }
 0x7ce   :  { %1442 = vmatpush.msrb.mxu0 %v1411_v38 }
 0x7d0   :  { %1443 = vmatpush.msrb.mxu0 %v1410_v31 }
 0x7d1   :  { %1841 = vmatmul.msk.f32.vlgmr.msrb.gmra.mxu0 %vm69_vm0, %v1418_v48  ;;  %v1687_v48 = vld [vmem:[%s3404_s2 + $0x2d0] sm:$0xff] }
 0x7d2   :  { %1569 = vmatpush.msra.mxu0 %v1552_v42  ;;  %1690 = vmatpush.msrb.mxu1 %v1687_v48  ;;  %v1683_v42 = vld [vmem:[%s3404_s2 + $0x2b0] sm:$0xff] }
 0x7d4   :  { %1570 = vmatpush.msra.mxu0 %v1551_v12 }
 0x7d6   :  { %1571 = vmatpush.msra.mxu0 %v1550_v27  ;;  %v1682_v27 = vld [vmem:[%s3404_s2 + $0x2a8] sm:$0xff] }
 0x7d8   :  { %1572 = vmatpush.msra.mxu0 %v1549_v53  ;;  %v1681_v53 = vld [vmem:[%s3404_s2 + $0x2a0] sm:$0xff] }
 0x7d9   :  { %1842 = vmatmul.msk.f32.gmra.mxu0 %vm69_vm0, %v1419_v35 }
 0x7da   :  { %1573 = vmatpush.msra.mxu0 %v1548_v28 }
 0x7dc   :  { %1574 = vmatpush.msra.mxu0 %v1547_v50 }
 0x7de   :  { %1575 = vmatpush.msra.mxu0 %v1546_v60 }
 0x7e0   :  { %1576 = vmatpush.msra.mxu0 %v1545_v33 }
 0x84e   :  { %v1445_v41 = vpop.f32.mrf.mxu0 }
 0x84f   :  { %v1446_v7 = vadd.f32 %v1445_v41, %v1420_v24 }
 0x851   :  { %v3218_v21 = vadd.f32 %v1446_v7, %v3465_v9  ;;  %v1686_v7 = vld [vmem:[%s3404_s2 + $0x2c8] sm:$0xff] }
 0x852   :  { %1691 = vmatpush.msrb.mxu1 %v1686_v7 }
 0x853   :  { %1843 = vmatmul.msk.f32.vlgmr.msra.gmra.mxu1 %vm69_vm0, %v3218_v21 }
 0x856   :  { %v1448_v51 = vpop.f32.mrf.mxu0 }
 0x857   :  { %v1449_v52 = vadd.f32 %v1448_v51, %v1421_v14 }
 0x859   :  { %v3226_v8 = vadd.f32 %v1449_v52, %v3466_v47  ;;  %v1685_v52 = vld [vmem:[%s3404_s2 + $0x2c0] sm:$0xff] }
 0x85a   :  { %1692 = vmatpush.msrb.mxu1 %v1685_v52 }
 0x85b   :  { %1844 = vmatmul.msk.f32.gmra.mxu1 %vm69_vm0, %v3226_v8 }
 0x8d0   :  { %v1476_v62 = vpop.f32.mrf.mxu1 }
 0x8d1   :  { %v1482_v26 = vsub.f32 %v3218_v21, %v1476_v62 }
 0x8d3   :  { %v1484_v18 = vmul.f32 %v1482_v26, %v1482_v26 }
 0x8d5   :  { %1845 = vmatmul.msk.f32.vlgmr.msrb.gmra.mxu2 %vm69_vm0, %v1484_v18 }
 0x8d8   :  { %v1479_v3 = vpop.f32.mrf.mxu1 }
 0x8d9   :  { %v1483_v45 = vsub.f32 %v3226_v8, %v1479_v3 }
 0x8db   :  { %v1485_v4 = vmul.f32 %v1483_v45, %v1483_v45 }
 0x8dd   :  { %1846 = vmatmul.msk.f32.gmra.mxu2 %vm69_vm0, %v1485_v4 }
 0x958   :  { %v1509_v15 = vpop.f32.mrf.mxu2 }
 0x959   :  { %v1510_v29 = vadd.f32 1e-05, %v1509_v15 }
 0x95b   :  { %1916 = vrsqrt.f32 %v1510_v29  ;;  %vm1521_vm10 = vweird.f32 %v1510_v29 }
 0x960   :  { %v1512_v22 = vpop.f32.mrf.mxu2 }
 0x961   :  { %v1917_v58 = vpop.eup %1916  ;;  %v1513_v10 = vadd.f32 1e-05, %v1512_v22  ;;  %v1680_v22 = vld [vmem:[%s3404_s2 + $0x298] sm:$0xff] }
 0x962   :  { %v1516_v44 = vmul.f32 %v1917_v58, %v1510_v29  ;;  %vm1522_vm15 = vweird.f32 %v1917_v58 }
 0x963   :  { %1918 = vrsqrt.f32 %v1513_v10  ;;  %vm1523_vm11 = vmor %vm1521_vm10, %vm1522_vm15  ;;  %vm1531_vm14 = vweird.f32 %v1513_v10 }
 0x964   :  { %v1517_v2 = vmul.f32 %v1917_v58, %v1516_v44 }
 0x966   :  { %v1518_v0 = vmul.f32 0.5, %v1517_v2 }
 0x968   :  { %v1519_v20 = vsub.f32 1.5, %v1518_v0 }
 0x969   :  { %v1919_v43 = vpop.eup %1918 }
 0x96a   :  { %v1520_v37 = vmul.f32 %v1917_v58, %v1519_v20  ;;  %v1526_v19 = vmul.f32 %v1919_v43, %v1513_v10  ;;  %vm1532_vm5 = vweird.f32 %v1919_v43  ;;  %v1679_v10 = vld [vmem:[%s3404_s2 + $0x290] sm:$0xff] }
 0x96b   :  { %vm1533_vm3 = vmor %vm1531_vm14, %vm1532_vm5 }
 0x96c   :  { %v1524_v54 = vsel %vm1523_vm11, %v1917_v58, %v1520_v37  ;;  %v1527_v13 = vmul.f32 %v1919_v43, %v1526_v19  ;;  %v1677_v19 = vld [vmem:[%s3404_s2 + $0x280] sm:$0xff] }
 0x96d   :  { %v1535_v55 = vmul.f32 %v1524_v54, %v1482_v26  ;;  %v1684_v26 = vld [vmem:[%s3404_s2 + $0x2b8] sm:$0xff] }
 0x96e   :  { %v1528_v46 = vmul.f32 0.5, %v1527_v13  ;;  %1693 = vmatpush.msrb.mxu1 %v1684_v26 }
 0x96f   :  { %v1539_v23 = vmul.f32 %v1863_v30, %v1535_v55  ;;  %v1676_v55 = vld [vmem:[%s3404_s2 + $0x278] sm:$0xff] }
 0x970   :  { %v1529_v16 = vsub.f32 1.5, %v1528_v46  ;;  %1694 = vmatpush.msrb.mxu1 %v1683_v42  ;;  %v1675_v46 = vld [vmem:[%s3404_s2 + $0x270] sm:$0xff] }
 0x971   :  { %v1543_v6 = vadd.f32 %v1864_v39, %v1539_v23 }
 0x972   :  { %v1530_v61 = vmul.f32 %v1919_v43, %v1529_v16  ;;  %1695 = vmatpush.msrb.mxu1 %v1682_v27 }
 0x973   :  { %1847 = vmatmul.msk.f32.vlgmr.msra.gmra.mxu0 %vm69_vm0, %v1543_v6 }
 0x974   :  { %v1534_v11 = vsel %vm1533_vm3, %v1919_v43, %v1530_v61  ;;  %1696 = vmatpush.msrb.mxu1 %v1681_v53  ;;  %v1678_v43 = vld [vmem:[%s3404_s2 + $0x288] sm:$0xff] }
 0x975   :  { %v1536_v5 = vmul.f32 %v1534_v11, %v1483_v45  ;;  %v1674_v11 = vld [vmem:[%s3404_s2 + $0x268] sm:$0xff] }
 0x976   :  { %1697 = vmatpush.msrb.mxu1 %v1680_v22 }
 0x977   :  { %v1540_v57 = vmul.f32 %v1863_v30, %v1536_v5 }
 0x978   :  { %1698 = vmatpush.msrb.mxu1 %v1679_v10  ;;  %v1747_v10 = vld [vmem:[%s3405_s3 + $0xc0] sm:$0xff] }
 0x979   :  { %v1544_v34 = vadd.f32 %v1864_v39, %v1540_v57 }
 0x97a   :  { %1699 = vmatpush.msrb.mxu1 %v1678_v43  ;;  %v1866_v43 = vld [vmem:[%s3404_s2 + $0x2d8] ss:$0 sm:$0xff] }
 0x97b   :  { %1848 = vmatmul.msk.f32.gmra.mxu0 %vm69_vm0, %v1544_v34  ;;  %v1673_v34 = vld [vmem:[%s3404_s2 + $0x260] sm:$0xff] }
 0x97c   :  { %1700 = vmatpush.msrb.mxu1 %v1677_v19 }
 0x97e   :  { %1701 = vmatpush.msrb.mxu1 %v1676_v55  ;;  %v1715_v55 = vld [vmem:[%s3403_s1 + $0x80] sm:$0xff]  ;;  %s1958_s1 = smov [#allocation2]  }
 0x97f   :  { %s1780_s12 = sshll.u32 %s1958_s1, 4  ;;  %s1781_s12 = int_to_ptr.vmem [resolvable:$true] %s1780_s12 }
 0x980   :  { %1702 = vmatpush.msrb.mxu1 %v1675_v46  ;;  %v1739_v46 = vld [vmem:[%s3404_s2 + $0xc8] sm:$0xff] }
 0x982   :  { %1703 = vmatpush.msrb.mxu1 %v1674_v11 }
 0x984   :  { %1704 = vmatpush.msrb.mxu1 %v1673_v34 }
 0x9f0   :  { %v1578_v40 = vpop.f32.mrf.mxu0 }
 0x9f1   :  { %v3269_v17 = vadd.f32 %v1865_v63, %v1578_v40 }
 0x9f3   :  { %v3272_v36 = vmul.f32 0.70710677, %v3269_v17 }
 0x9f5   :  { %v1588_v56 = vmul.f32 %v3272_v36, %v3272_v36 }
 0x9f7   :  { %v3276_v32 = vmin.f32 %v1588_v56, 16.0 }
 0x9f8   :  { %v1581_v1 = vpop.f32.mrf.mxu0 }
 0x9f9   :  { %v1590_v59 = vmul.f32 2.1237322e-06, %v3276_v32  ;;  %v1601_v49 = vmul.f32 3.8918573e-05, %v3276_v32  ;;  %v3280_v25 = vadd.f32 %v1865_v63, %v1581_v1 }
 0x9fb   :  { %v1591_v38 = vadd.f32 0.00028619796, %v1590_v59  ;;  %v1602_v31 = vadd.f32 0.001143296, %v1601_v49  ;;  %v3286_v35 = vmul.f32 0.70710677, %v3280_v25 }
 0x9fc   :  { %v1672_v59 = vld [vmem:[%s3404_s2 + $0x258] sm:$0xff] }
 0x9fd   :  { %v1592_v24 = vmul.f32 %v1591_v38, %v3276_v32  ;;  %v1603_v41 = vmul.f32 %v1602_v31, %v3276_v32  ;;  %v1628_v9 = vmul.f32 %v3286_v35, %v3286_v35  ;;  %1705 = vmatpush.msrb.mxu1 %v1672_v59 }
 0x9ff   :  { %v1593_v14 = vadd.f32 0.0036580483, %v1592_v24  ;;  %v1604_v51 = vadd.f32 0.014752088, %v1603_v41  ;;  %v3298_v47 = vmin.f32 %v1628_v9, 16.0 }
 0xa01   :  { %v1605_v62 = vmul.f32 %v1604_v51, %v3276_v32  ;;  %v1630_v18 = vmul.f32 2.1237322e-06, %v3298_v47  ;;  %v1641_v3 = vmul.f32 3.8918573e-05, %v3298_v47  ;;  %v1594_v45 = vmul.f32 %v1593_v14, %v3276_v32 }
 0xa03   :  { %v1606_v4 = vadd.f32 0.112945676, %v1605_v62  ;;  %v1631_v12 = vadd.f32 0.00028619796, %v1630_v18  ;;  %v1642_v29 = vadd.f32 0.001143296, %v1641_v3 }
 0xa04   :  { %v1595_v28 = vadd.f32 0.05243302, %v1594_v45  ;;  %v1584_v3 = vmul.f32 0.5, %v3269_v17  ;;  %v1585_v17 = vmul.f32 0.5, %v3280_v25  ;;  %v1745_v25 = vld [vmem:[%s3405_s3 + $0xb0] sm:$0xff] }
 0xa05   :  { %v1607_v15 = vmul.f32 %v1606_v4, %v3276_v32  ;;  %v1632_v60 = vmul.f32 %v1631_v12, %v3298_v47  ;;  %v1643_v33 = vmul.f32 %v1642_v29, %v3298_v47 }
 0xa06   :  { %v1596_v2 = vmul.f32 %v1595_v28, %v3276_v32 }
 0xa07   :  { %v1608_v50 = vadd.f32 0.4994258, %v1607_v15  ;;  %v1644_v44 = vadd.f32 0.014752088, %v1643_v33  ;;  %v1633_v20 = vadd.f32 0.0036580483, %v1632_v60 }
 0xa08   :  { %v1597_v54 = vadd.f32 0.18741608, %v1596_v2  ;;  %v1743_v2 = vld [vmem:[%s3405_s3 + $0xa0] sm:$0xff] }
 0xa09   :  { %v1609_v58 = vmul.f32 %v1608_v50, %v3276_v32  ;;  %v1645_v37 = vmul.f32 %v1644_v44, %v3298_v47  ;;  %v1634_v13 = vmul.f32 %v1633_v20, %v3298_v47  ;;  %v1744_v44 = vld [vmem:[%s3405_s3 + $0xa8] sm:$0xff] }
 0xa0a   :  { %v1598_v6 = vmul.f32 %v1597_v54, %v3276_v32 }
 0xa0b   :  { %v1610_v0 = vadd.f32 1.0, %v1609_v58  ;;  %v1646_v30 = vadd.f32 0.112945676, %v1645_v37  ;;  %v1635_v61 = vadd.f32 0.05243302, %v1634_v13  ;;  %v1748_v58 = vld [vmem:[%s3405_s3 + $0xc8] sm:$0xff] }
 0xa0c   :  { %v1599_v56 = vadd.f32 1.1283791, %v1598_v6  ;;  %1762 = vmatpush.msrb.mxu0 %v1748_v58 }
 0xa0d   :  { %1920 = vrcp.f32 %v1610_v0  ;;  %v1647_v39 = vmul.f32 %v1646_v30, %v3298_v47  ;;  %v1622_v1 = vand.u32 2147483648, %v1610_v0  ;;  %v1636_v32 = vmul.f32 %v1635_v61, %v3298_v47 }
 0xa0e   :  { %v1620_v38 = vand.u32 2147483647, %v1610_v0  ;;  %vm1616_vm2 = vweird.f32 %v1610_v0  ;;  %v1600_v41 = vmul.f32 %v1599_v56, %v3272_v36  ;;  %1763 = vmatpush.msrb.mxu0 %v1747_v10 }
 0xa0f   :  { %v1648_v23 = vadd.f32 0.4994258, %v1647_v39  ;;  %v1623_v48 = vor.u32 1.1754944e-38, %v1622_v1  ;;  %v1637_v24 = vadd.f32 0.18741608, %v1636_v32  ;;  %v1741_v39 = vld [vmem:[%s3405_s3 + $0x90] sm:$0xff] }
 0xa10   :  { %vm1621_vm12 = vcmp.eq.f32.partialorder %v1620_v38, 8.507059e+37 }
 0xa11   :  { %v1649_v57 = vmul.f32 %v1648_v23, %v3298_v47  ;;  %v1638_v52 = vmul.f32 %v1637_v24, %v3298_v47 }
 0xa13   :  { %v1921_v16 = vpop.eup %1920  ;;  %v1650_v40 = vadd.f32 1.0, %v1649_v57  ;;  %v1639_v42 = vadd.f32 1.1283791, %v1638_v52 }
 0xa14   :  { %v1612_v5 = vmul.f32 %v1921_v16, %v1610_v0  ;;  %vm1617_vm6 = vweird.f32 %v1921_v16  ;;  %v1742_v0 = vld [vmem:[%s3405_s3 + $0x98] sm:$0xff] }
 0xa15   :  { %1922 = vrcp.f32 %v1650_v40  ;;  %vm1618_vm1 = vmor %vm1616_vm2, %vm1617_vm6  ;;  %v1662_v4 = vand.u32 2147483648, %v1650_v40  ;;  %v1660_v27 = vand.u32 2147483647, %v1650_v40  ;;  %vm1656_vm13 = vweird.f32 %v1650_v40 }
 0xa16   :  { %v1613_v63 = vsub.f32 1.0, %v1612_v5  ;;  %v1640_v29 = vmul.f32 %v1639_v42, %v3286_v35  ;;  %v1746_v35 = vld [vmem:[%s3405_s3 + $0xb8] sm:$0xff] }
 0xa17   :  { %v1663_v53 = vor.u32 1.1754944e-38, %v1662_v4  ;;  %vm1661_vm8 = vcmp.eq.f32.partialorder %v1660_v27, 8.507059e+37  ;;  %1764 = vmatpush.msrb.mxu0 %v1746_v35 }
 0xa18   :  { %v1614_v49 = vmul.f32 %v1921_v16, %v1613_v63 }
 0xa19   :  { %1765 = vmatpush.msrb.mxu0 %v1745_v25 }
 0xa1a   :  { %v1615_v31 = vadd.f32 %v1921_v16, %v1614_v49 }
 0xa1b   :  { %v1923_v14 = vpop.eup %1922  ;;  %1766 = vmatpush.msrb.mxu0 %v1744_v44 }
 0xa1c   :  { %v1619_v7 = vsel %vm1618_vm1, %v1921_v16, %v1615_v31  ;;  %v1652_v62 = vmul.f32 %v1923_v14, %v1650_v40  ;;  %vm1657_vm9 = vweird.f32 %v1923_v14 }
 0xa1d   :  { %v1624_v9 = vsel %vm1621_vm12, %v1623_v48, %v1619_v7  ;;  %vm1658_vm4 = vmor %vm1656_vm13, %vm1657_vm9  ;;  %1767 = vmatpush.msrb.mxu0 %v1743_v2 }
 0xa1e   :  { %v1625_v51 = vmul.f32 %v1624_v9, %v1600_v41  ;;  %v1653_v18 = vsub.f32 1.0, %v1652_v62 }
 0xa1f   :  { %1768 = vmatpush.msrb.mxu0 %v1742_v0 }
 0xa20   :  { %v1849_v26 = vclamps-f32 %v1625_v51, 1.0  ;;  %v1654_v12 = vmul.f32 %v1923_v14, %v1653_v18 }
 0xa21   :  { %1769 = vmatpush.msrb.mxu0 %v1741_v39 }
 0xa22   :  { %v1668_v45 = vadd.f32 1.0, %v1849_v26  ;;  %v1655_v36 = vadd.f32 %v1923_v14, %v1654_v12 }
 0xa24   :  { %v1670_v15 = vmul.f32 %v1668_v45, %v1584_v3  ;;  %v1659_v47 = vsel %vm1658_vm4, %v1923_v14, %v1655_v36 }
 0xa25   :  { %v1664_v28 = vsel %vm1661_vm8, %v1663_v53, %v1659_v47 }
 0xa26   :  { %1706 = vmatmul.f32.vlgmr.msrb.gmra.mxu1 %v1670_v15  ;;  %v1665_v50 = vmul.f32 %v1664_v28, %v1640_v29 }
 0xa28   :  { %v1850_v60 = vclamps-f32 %v1665_v50, 1.0 }
 0xa2a   :  { %v1669_v22 = vadd.f32 1.0, %v1850_v60 }
 0xa2c   :  { %v1671_v33 = vmul.f32 %v1669_v22, %v1585_v17 }
 0xa2e   :  { %1709 = vmatmul.f32.gmra.mxu1 %v1671_v33 }
 0xaa3   :  { %v1707_v20 = vpop.f32.mrf.mxu1 }
 0xaa4   :  { %v1708_v19 = vadd.f32 %v1866_v43, %v1707_v20 }
 0xaa6   :  { %v1713_v13 = vadd.f32 %v1708_v19, %v3218_v21  ;;  %v1867_v21 = vld [vmem:[%s3405_s3 + $0xd0] ss:$0 sm:$0xff] }
 0xaab   :  { %v1710_v37 = vpop.f32.mrf.mxu1 }
 0xaac   :  { %v1711_v30 = vadd.f32 %v1866_v43, %v1710_v37 }
 0xaae   :  { %v1714_v54 = vadd.f32 %v1711_v30, %v3226_v8 }
 0xab0   :  { %1733 = vmatpush.msra.mxu2 %v1714_v54 }
 0xab2   :  { %1734 = vmatpush.msra.mxu2 %v1713_v13 }
 0xab3   :  { %1851 = vmatmul.msk.f32.vlgmr.msra.gmra.mxu2 %vm178_vm7, %v1715_v55 }
 0xb36   :  { %v1736_v8 = vpop.f32.mrf.mxu2 }
 0xb37   :  { %v1740_v23 = vmul.f32 %v1739_v46, %v1736_v8 }
 0xb39   :  { %1852 = vmatmul.msk.f32.vlgmr.msrb.gmra.mxu0 %vm69_vm0, %v1740_v23 }
 0xbb6   :  { %v1771_v16 = vpop.f32.mrf.mxu0 }
 0xbb7   :  { %v1772_v6 = vadd.f32 %v1867_v21, %v1771_v16 }
 0xbb9   :  { %1774 = vst [vmem:[#allocation2] sm:$0xff] %v1772_v6 }
 0xbba   :  { %1785 = dma.vmem_to_hbm [thread:$0]  %s1781_s12, 128, %s1783_s0, [#allocation3]  }
 0xbbb   :  { %1956 = dma.done.wait [#allocation3], 128  }
 0xbbc   :  { %1957 = vsyncadd [#allocation3], 4294967168 }
 0xbbd   :  { %1790 = vsyncpa [#allocation3], 1 }

</bundles_post_ra>
